<compile_context>
chip_gen: v6e
topology: v6e:2x2x1
jax: 0.10.0
libtpu: 0.0.40
codegen_flags: <defaults>
</compile_context>

<pallas_src>
import jax
import jax.numpy as jnp
from jax import lax
from jax.experimental import pallas as pl
from jax.experimental.pallas import tpu as pltpu

YEARS = 36      # LSTM input size
HIDDEN = 20     # LSTM hidden size
OUT = 2         # fc output size


def lstm_fc_kernel(x_ref, wih0_ref, whhf_ref, b0_ref,
                   wih1_ref, b1_ref,
                   wfc_ref, bfc_ref,
                   out_ref,
                   gin, hseq):
    """2-layer LSTM over time (batch already sliced to the last element) + final Linear.

    x_ref:    (T, 36)       VMEM   (last batch element only)
    wih0_ref: (36, 80)      layer-0 input weights, transposed, gate order i,f,g,o
    whhf_ref: (40, 160)     block-diag fused recurrent weights [[whh0^T,0],[0,whh1^T]]
    b0_ref:   (1, 80)       folded b_ih_l0 + b_hh_l0
    wih1_ref: (20, 80)      layer-1 input weights, transposed
    b1_ref:   (1, 80)       folded b_ih_l1 + b_hh_l1
    wfc_ref:  (20, 2), bfc_ref: (1, 2)
    out_ref:  (T, 2)
    scratch:  gin  = (T, 80) precomputed layer-0 input gates
              hseq = (T, 20) collected layer-1 hidden state per step
    """
    T = x_ref.shape[0]
    H = HIDDEN

    # Hoist the layer-0 input projection out of the recurrence: one well-shaped
    # (T,36)@(36,80) matmul + bias, off the serial h_t -> h_{t+1} chain.
    gin[...] = (jnp.dot(x_ref[...], wih0_ref[...],
                        preferred_element_type=jnp.float32) + b0_ref[...])

    def gates_to_hc(gates, c_prev):
        # Apply sigmoid/tanh to the whole (1, 4H) gate vector once (EUP pushes: 2
        # instead of 4); the lane-offset slices go to the XLU slot (free filler).
        sig = jax.nn.sigmoid(gates)
        th = jnp.tanh(gates)
        i = sig[:, 0 * H:1 * H]
        f = sig[:, 1 * H:2 * H]
        g = th[:, 2 * H:3 * H]
        o = sig[:, 3 * H:4 * H]
        c_new = f * c_prev + i * g
        h_new = o * jnp.tanh(c_new)
        return h_new, c_new

    def step(t, carry):
        hcat, c0, c1 = carry                          # (1,2H), (1,H), (1,H)
        # One fused recurrent matmul: [h0|h1] @ blockdiag(whh0^T, whh1^T) -> (1, 8H)
        rec = jnp.dot(hcat, whhf_ref[...], preferred_element_type=jnp.float32)
        # layer 0: precomputed input gates + recurrent part
        g0 = gin[pl.ds(t, 1), :] + rec[:, :4 * H]
        h0n, c0n = gates_to_hc(g0, c0)
        # layer 1: depends on this step's layer-0 output (must stay separate)
        g1 = (jnp.dot(h0n, wih1_ref[...], preferred_element_type=jnp.float32)
              + b1_ref[...] + rec[:, 4 * H:])
        h1n, c1n = gates_to_hc(g1, c1)
        hseq[pl.ds(t, 1), :] = h1n
        return jnp.concatenate([h0n, h1n], axis=1), c0n, c1n

    init = (jnp.zeros((1, 2 * H), jnp.float32),       # [h0 | h1]
            jnp.zeros((1, H), jnp.float32),           # c0
            jnp.zeros((1, H), jnp.float32))           # c1
    # T is static and small: fully unroll so the LLO scheduler can co-issue
    # independent work across timesteps.
    lax.fori_loop(0, T, step, init, unroll=True)

    # Final Linear(20 -> 2) applied to the collected (T, 20) slab in one matmul.
    out_ref[...] = (jnp.dot(hseq[...], wfc_ref[...],
                            preferred_element_type=jnp.float32)
                    + bfc_ref[...]).astype(out_ref.dtype)


def init_params(key):
    """Deterministic parameter init matching PyTorch shapes (uniform +-1/sqrt(H))."""
    bound = 1.0 / jnp.sqrt(jnp.float32(HIDDEN))
    keys = jax.random.split(key, 10)

    def u(k, shape):
        return jax.random.uniform(k, shape, jnp.float32, -bound, bound)

    w_ih_l0 = u(keys[0], (4 * HIDDEN, YEARS))    # (80, 36)
    w_hh_l0 = u(keys[1], (4 * HIDDEN, HIDDEN))   # (80, 20)
    b_ih_l0 = u(keys[2], (4 * HIDDEN,))
    b_hh_l0 = u(keys[3], (4 * HIDDEN,))
    w_ih_l1 = u(keys[4], (4 * HIDDEN, HIDDEN))   # (80, 20)
    w_hh_l1 = u(keys[5], (4 * HIDDEN, HIDDEN))   # (80, 20)
    b_ih_l1 = u(keys[6], (4 * HIDDEN,))
    b_hh_l1 = u(keys[7], (4 * HIDDEN,))
    w_fc = u(keys[8], (OUT, HIDDEN))             # (2, 20)
    b_fc = u(keys[9], (OUT,))

    # Block-diagonal fused recurrent weight so [h0 | h1] @ whhf = [h0@whh0^T | h1@whh1^T].
    whhf = jnp.zeros((2 * HIDDEN, 8 * HIDDEN), jnp.float32)
    whhf = whhf.at[:HIDDEN, :4 * HIDDEN].set(w_hh_l0.T)
    whhf = whhf.at[HIDDEN:, 4 * HIDDEN:].set(w_hh_l1.T)

    # Pre-transpose input weights and fold the two LSTM biases (b_ih + b_hh).
    return (w_ih_l0.T, whhf, (b_ih_l0 + b_hh_l0).reshape(1, -1),
            w_ih_l1.T, (b_ih_l1 + b_hh_l1).reshape(1, -1),
            w_fc.T, b_fc.reshape(1, -1))


@jax.jit
def model_forward(x, params):
    T, B, _ = x.shape
    # out[:, -1, :] only depends on the LAST batch element; LSTM batch elements are
    # independent, so run the recurrence on that slice only (numerically identical).
    x_last = x[:, B - 1, :]                                   # (T, 36)
    vmem = pl.BlockSpec(memory_space=pltpu.MemorySpace.VMEM)
    kernel = pl.pallas_call(
        lstm_fc_kernel,
        out_shape=jax.ShapeDtypeStruct((T, OUT), jnp.float32),
        in_specs=[vmem] * (1 + len(params)),
        out_specs=vmem,
        scratch_shapes=[
            pltpu.VMEM((T, 4 * HIDDEN), jnp.float32),   # gin : precomputed layer-0 gates
            pltpu.VMEM((T, HIDDEN), jnp.float32),       # hseq: collected h1 per step
        ],
    )
    return kernel(x_last, *params)


def reference_forward(x, params):
    """Pure-JAX reference of the same forward pass for a correctness check."""
    wih0, whhf, b0, wih1, b1, wfc, bfc = params
    whh0 = whhf[:HIDDEN, :4 * HIDDEN]
    whh1 = whhf[HIDDEN:, 4 * HIDDEN:]
    T, B, _ = x.shape
    H = HIDDEN

    def cell(x_t, h, c, wih, whh, b):
        g = x_t @ wih + h @ whh + b
        i = jax.nn.sigmoid(g[:, :H])
        f = jax.nn.sigmoid(g[:, H:2 * H])
        gg = jnp.tanh(g[:, 2 * H:3 * H])
        o = jax.nn.sigmoid(g[:, 3 * H:])
        c = f * c + i * gg
        h = o * jnp.tanh(c)
        return h, c

    h0 = jnp.zeros((B, H), jnp.float32)
    c0 = jnp.zeros((B, H), jnp.float32)
    h1 = jnp.zeros((B, H), jnp.float32)
    c1 = jnp.zeros((B, H), jnp.float32)
    outs = []
    for t in range(T):
        h0, c0 = cell(x[t], h0, c0, wih0, whh0, b0)
        h1, c1 = cell(h0, h1, c1, wih1, whh1, b1)
        outs.append(h1[-1])          # out[:, -1, :]: last batch element
    hseq = jnp.stack(outs)           # (T, H)
    return hseq @ wfc + bfc          # (T, 2)


if __name__ == "__main__":
    key = jax.random.PRNGKey(0)
    kx, kp = jax.random.split(key)

    seq_len, batch = 8, 2
    x = jax.random.normal(kx, (seq_len, batch, YEARS), jnp.float32)
    params = init_params(kp)

    out = model_forward(x, params)
    jax.block_until_ready(out)

    ref = reference_forward(x, params)
    assert out.shape == (seq_len, OUT), out.shape
    assert jnp.allclose(out, ref, atol=1e-4, rtol=1e-4), (out, ref)

    print("KERNEL_OK")
</pallas_src>

<mosaic_0001>
module attributes {stable_mosaic.version = 11 : i64} {
  func.func @lstm_fc_kernel(%arg0: memref<8x36xf32, #tpu.memory_space<vmem>>, %arg1: memref<36x80xf32, #tpu.memory_space<vmem>>, %arg2: memref<40x160xf32, #tpu.memory_space<vmem>>, %arg3: memref<1x80xf32, #tpu.memory_space<vmem>>, %arg4: memref<20x80xf32, #tpu.memory_space<vmem>>, %arg5: memref<1x80xf32, #tpu.memory_space<vmem>>, %arg6: memref<20x2xf32, #tpu.memory_space<vmem>>, %arg7: memref<1x2xf32, #tpu.memory_space<vmem>>, %arg8: memref<8x2xf32, #tpu.memory_space<vmem>>, %arg9: memref<8x80xf32, #tpu.memory_space<vmem>>, %arg10: memref<8x20xf32, #tpu.memory_space<vmem>>) attributes {dimension_semantics = [], scalar_prefetch = 0 : i64, scratch_operands = 2 : i64, tpu.core_type = #tpu.core_type<tc>} {
    %c0 = arith.constant 0 : index
    %c0_0 = arith.constant 0 : index
    %0 = vector.load %arg0[%c0, %c0_0] : memref<8x36xf32, #tpu.memory_space<vmem>>, vector<8x36xf32>
    %c0_1 = arith.constant 0 : index
    %c0_2 = arith.constant 0 : index
    %1 = vector.load %arg1[%c0_1, %c0_2] : memref<36x80xf32, #tpu.memory_space<vmem>>, vector<36x80xf32>
    %cst = arith.constant dense<0.000000e+00> : vector<8x80xf32>
    %2 = tpu.matmul %0, %1, %cst {dimension_numbers = #tpu.dot_dimension_numbers<[1], [0], [0], [1], [0, 0, 1, 1], [], []>} : vector<8x36xf32>, vector<36x80xf32>, vector<8x80xf32> -> vector<8x80xf32>
    %c0_3 = arith.constant 0 : index
    %c0_4 = arith.constant 0 : index
    %3 = vector.load %arg3[%c0_3, %c0_4] : memref<1x80xf32, #tpu.memory_space<vmem>>, vector<1x80xf32>
    %4 = vector.broadcast %3 : vector<1x80xf32> to vector<8x80xf32>
    %5 = arith.addf %2, %4 : vector<8x80xf32>
    %c0_5 = arith.constant 0 : index
    %c0_6 = arith.constant 0 : index
    %6 = vector.load %arg9[%c0_5, %c0_6] : memref<8x80xf32, #tpu.memory_space<vmem>>, vector<8x80xf32>
    tpu.vector_store %arg9[%c0_5, %c0_6], %5 {strides = array<i32>} : memref<8x80xf32, #tpu.memory_space<vmem>>, vector<8x80xf32>,
    %cst_7 = arith.constant 0.000000e+00 : f32
    %7 = vector.broadcast %cst_7 : f32 to vector<1x40xf32>
    %cst_8 = arith.constant 0.000000e+00 : f32
    %8 = vector.broadcast %cst_8 : f32 to vector<1x20xf32>
    %cst_9 = arith.constant 0.000000e+00 : f32
    %9 = vector.broadcast %cst_9 : f32 to vector<1x20xf32>
    %c0_i32 = arith.constant 0 : i32
    %c0_10 = arith.constant 0 : index
    %c0_11 = arith.constant 0 : index
    %10 = vector.load %arg2[%c0_10, %c0_11] : memref<40x160xf32, #tpu.memory_space<vmem>>, vector<40x160xf32>
    %cst_12 = arith.constant dense<0.000000e+00> : vector<1x160xf32>
    %11 = tpu.matmul %7, %10, %cst_12 {dimension_numbers = #tpu.dot_dimension_numbers<[1], [0], [0], [1], [0, 0, 1, 1], [], []>} : vector<1x40xf32>, vector<40x160xf32>, vector<1x160xf32> -> vector<1x160xf32>
    %12 = arith.index_cast %c0_i32 : i32 to index
    %c0_13 = arith.constant 0 : index
    %13 = vector.load %arg9[%12, %c0_13] : memref<8x80xf32, #tpu.memory_space<vmem>>, vector<1x80xf32>
    %14 = vector.extract_strided_slice %11 {offsets = [0, 0], sizes = [1, 80], strides = [1, 1]} : vector<1x160xf32> to vector<1x80xf32>
    %15 = arith.addf %13, %14 : vector<1x80xf32>
    %16 = arith.negf %15 : vector<1x80xf32>
    %17 = math.exp %16 : vector<1x80xf32>
    %cst_14 = arith.constant 1.000000e+00 : f32
    %18 = vector.broadcast %cst_14 : f32 to vector<1x80xf32>
    %19 = arith.addf %18, %17 : vector<1x80xf32>
    %20 = arith.divf %18, %19 : vector<1x80xf32>
    %21 = math.tanh %15 : vector<1x80xf32>
    %22 = vector.extract_strided_slice %20 {offsets = [0, 0], sizes = [1, 20], strides = [1, 1]} : vector<1x80xf32> to vector<1x20xf32>
    %23 = vector.extract_strided_slice %20 {offsets = [0, 20], sizes = [1, 20], strides = [1, 1]} : vector<1x80xf32> to vector<1x20xf32>
    %24 = vector.extract_strided_slice %21 {offsets = [0, 40], sizes = [1, 20], strides = [1, 1]} : vector<1x80xf32> to vector<1x20xf32>
    %25 = vector.extract_strided_slice %20 {offsets = [0, 60], sizes = [1, 20], strides = [1, 1]} : vector<1x80xf32> to vector<1x20xf32>
    %26 = arith.mulf %23, %8 : vector<1x20xf32>
    %27 = arith.mulf %22, %24 : vector<1x20xf32>
    %28 = arith.addf %26, %27 : vector<1x20xf32>
    %29 = math.tanh %28 : vector<1x20xf32>
    %30 = arith.mulf %25, %29 : vector<1x20xf32>
    %c0_15 = arith.constant 0 : index
    %c0_16 = arith.constant 0 : index
    %31 = vector.load %arg4[%c0_15, %c0_16] : memref<20x80xf32, #tpu.memory_space<vmem>>, vector<20x80xf32>
    %cst_17 = arith.constant dense<0.000000e+00> : vector<1x80xf32>
    %32 = tpu.matmul %30, %31, %cst_17 {dimension_numbers = #tpu.dot_dimension_numbers<[1], [0], [0], [1], [0, 0, 1, 1], [], []>} : vector<1x20xf32>, vector<20x80xf32>, vector<1x80xf32> -> vector<1x80xf32>
    %c0_18 = arith.constant 0 : index
    %c0_19 = arith.constant 0 : index
    %33 = vector.load %arg5[%c0_18, %c0_19] : memref<1x80xf32, #tpu.memory_space<vmem>>, vector<1x80xf32>
    %34 = arith.addf %32, %33 : vector<1x80xf32>
    %35 = vector.extract_strided_slice %11 {offsets = [0, 80], sizes = [1, 80], strides = [1, 1]} : vector<1x160xf32> to vector<1x80xf32>
    %36 = arith.addf %34, %35 : vector<1x80xf32>
    %37 = arith.negf %36 : vector<1x80xf32>
    %38 = math.exp %37 : vector<1x80xf32>
    %cst_20 = arith.constant 1.000000e+00 : f32
    %39 = vector.broadcast %cst_20 : f32 to vector<1x80xf32>
    %40 = arith.addf %39, %38 : vector<1x80xf32>
    %41 = arith.divf %39, %40 : vector<1x80xf32>
    %42 = math.tanh %36 : vector<1x80xf32>
    %43 = vector.extract_strided_slice %41 {offsets = [0, 0], sizes = [1, 20], strides = [1, 1]} : vector<1x80xf32> to vector<1x20xf32>
    %44 = vector.extract_strided_slice %41 {offsets = [0, 20], sizes = [1, 20], strides = [1, 1]} : vector<1x80xf32> to vector<1x20xf32>
    %45 = vector.extract_strided_slice %42 {offsets = [0, 40], sizes = [1, 20], strides = [1, 1]} : vector<1x80xf32> to vector<1x20xf32>
    %46 = vector.extract_strided_slice %41 {offsets = [0, 60], sizes = [1, 20], strides = [1, 1]} : vector<1x80xf32> to vector<1x20xf32>
    %47 = arith.mulf %44, %9 : vector<1x20xf32>
    %48 = arith.mulf %43, %45 : vector<1x20xf32>
    %49 = arith.addf %47, %48 : vector<1x20xf32>
    %50 = math.tanh %49 : vector<1x20xf32>
    %51 = arith.mulf %46, %50 : vector<1x20xf32>
    %52 = arith.index_cast %c0_i32 : i32 to index
    %c0_21 = arith.constant 0 : index
    %53 = vector.load %arg10[%52, %c0_21] : memref<8x20xf32, #tpu.memory_space<vmem>>, vector<1x20xf32>
    tpu.vector_store %arg10[%52, %c0_21], %51 {strides = array<i32>} : memref<8x20xf32, #tpu.memory_space<vmem>>, vector<1x20xf32>,
    %54 = tpu.concatenate %30, %51 in 1 : vector<1x20xf32>, vector<1x20xf32> -> vector<1x40xf32>
    %c1_i32 = arith.constant 1 : i32
    %c0_22 = arith.constant 0 : index
    %c0_23 = arith.constant 0 : index
    %55 = vector.load %arg2[%c0_22, %c0_23] : memref<40x160xf32, #tpu.memory_space<vmem>>, vector<40x160xf32>
    %cst_24 = arith.constant dense<0.000000e+00> : vector<1x160xf32>
    %56 = tpu.matmul %54, %55, %cst_24 {dimension_numbers = #tpu.dot_dimension_numbers<[1], [0], [0], [1], [0, 0, 1, 1], [], []>} : vector<1x40xf32>, vector<40x160xf32>, vector<1x160xf32> -> vector<1x160xf32>
    %57 = arith.index_cast %c1_i32 : i32 to index
    %c0_25 = arith.constant 0 : index
    %58 = vector.load %arg9[%57, %c0_25] : memref<8x80xf32, #tpu.memory_space<vmem>>, vector<1x80xf32>
    %59 = vector.extract_strided_slice %56 {offsets = [0, 0], sizes = [1, 80], strides = [1, 1]} : vector<1x160xf32> to vector<1x80xf32>
    %60 = arith.addf %58, %59 : vector<1x80xf32>
    %61 = arith.negf %60 : vector<1x80xf32>
    %62 = math.exp %61 : vector<1x80xf32>
    %cst_26 = arith.constant 1.000000e+00 : f32
    %63 = vector.broadcast %cst_26 : f32 to vector<1x80xf32>
    %64 = arith.addf %63, %62 : vector<1x80xf32>
    %65 = arith.divf %63, %64 : vector<1x80xf32>
    %66 = math.tanh %60 : vector<1x80xf32>
    %67 = vector.extract_strided_slice %65 {offsets = [0, 0], sizes = [1, 20], strides = [1, 1]} : vector<1x80xf32> to vector<1x20xf32>
    %68 = vector.extract_strided_slice %65 {offsets = [0, 20], sizes = [1, 20], strides = [1, 1]} : vector<1x80xf32> to vector<1x20xf32>
    %69 = vector.extract_strided_slice %66 {offsets = [0, 40], sizes = [1, 20], strides = [1, 1]} : vector<1x80xf32> to vector<1x20xf32>
    %70 = vector.extract_strided_slice %65 {offsets = [0, 60], sizes = [1, 20], strides = [1, 1]} : vector<1x80xf32> to vector<1x20xf32>
    %71 = arith.mulf %68, %28 : vector<1x20xf32>
    %72 = arith.mulf %67, %69 : vector<1x20xf32>
    %73 = arith.addf %71, %72 : vector<1x20xf32>
    %74 = math.tanh %73 : vector<1x20xf32>
    %75 = arith.mulf %70, %74 : vector<1x20xf32>
    %c0_27 = arith.constant 0 : index
    %c0_28 = arith.constant 0 : index
    %76 = vector.load %arg4[%c0_27, %c0_28] : memref<20x80xf32, #tpu.memory_space<vmem>>, vector<20x80xf32>
    %cst_29 = arith.constant dense<0.000000e+00> : vector<1x80xf32>
    %77 = tpu.matmul %75, %76, %cst_29 {dimension_numbers = #tpu.dot_dimension_numbers<[1], [0], [0], [1], [0, 0, 1, 1], [], []>} : vector<1x20xf32>, vector<20x80xf32>, vector<1x80xf32> -> vector<1x80xf32>
    %c0_30 = arith.constant 0 : index
    %c0_31 = arith.constant 0 : index
    %78 = vector.load %arg5[%c0_30, %c0_31] : memref<1x80xf32, #tpu.memory_space<vmem>>, vector<1x80xf32>
    %79 = arith.addf %77, %78 : vector<1x80xf32>
    %80 = vector.extract_strided_slice %56 {offsets = [0, 80], sizes = [1, 80], strides = [1, 1]} : vector<1x160xf32> to vector<1x80xf32>
    %81 = arith.addf %79, %80 : vector<1x80xf32>
    %82 = arith.negf %81 : vector<1x80xf32>
    %83 = math.exp %82 : vector<1x80xf32>
    %cst_32 = arith.constant 1.000000e+00 : f32
    %84 = vector.broadcast %cst_32 : f32 to vector<1x80xf32>
    %85 = arith.addf %84, %83 : vector<1x80xf32>
    %86 = arith.divf %84, %85 : vector<1x80xf32>
    %87 = math.tanh %81 : vector<1x80xf32>
    %88 = vector.extract_strided_slice %86 {offsets = [0, 0], sizes = [1, 20], strides = [1, 1]} : vector<1x80xf32> to vector<1x20xf32>
    %89 = vector.extract_strided_slice %86 {offsets = [0, 20], sizes = [1, 20], strides = [1, 1]} : vector<1x80xf32> to vector<1x20xf32>
    %90 = vector.extract_strided_slice %87 {offsets = [0, 40], sizes = [1, 20], strides = [1, 1]} : vector<1x80xf32> to vector<1x20xf32>
    %91 = vector.extract_strided_slice %86 {offsets = [0, 60], sizes = [1, 20], strides = [1, 1]} : vector<1x80xf32> to vector<1x20xf32>
    %92 = arith.mulf %89, %49 : vector<1x20xf32>
    %93 = arith.mulf %88, %90 : vector<1x20xf32>
    %94 = arith.addf %92, %93 : vector<1x20xf32>
    %95 = math.tanh %94 : vector<1x20xf32>
    %96 = arith.mulf %91, %95 : vector<1x20xf32>
    %97 = arith.index_cast %c1_i32 : i32 to index
    %c0_33 = arith.constant 0 : index
    %98 = vector.load %arg10[%97, %c0_33] : memref<8x20xf32, #tpu.memory_space<vmem>>, vector<1x20xf32>
    tpu.vector_store %arg10[%97, %c0_33], %96 {strides = array<i32>} : memref<8x20xf32, #tpu.memory_space<vmem>>, vector<1x20xf32>,
    %99 = tpu.concatenate %75, %96 in 1 : vector<1x20xf32>, vector<1x20xf32> -> vector<1x40xf32>
    %c2_i32 = arith.constant 2 : i32
    %c0_34 = arith.constant 0 : index
    %c0_35 = arith.constant 0 : index
    %100 = vector.load %arg2[%c0_34, %c0_35] : memref<40x160xf32, #tpu.memory_space<vmem>>, vector<40x160xf32>
    %cst_36 = arith.constant dense<0.000000e+00> : vector<1x160xf32>
    %101 = tpu.matmul %99, %100, %cst_36 {dimension_numbers = #tpu.dot_dimension_numbers<[1], [0], [0], [1], [0, 0, 1, 1], [], []>} : vector<1x40xf32>, vector<40x160xf32>, vector<1x160xf32> -> vector<1x160xf32>
    %102 = arith.index_cast %c2_i32 : i32 to index
    %c0_37 = arith.constant 0 : index
    %103 = vector.load %arg9[%102, %c0_37] : memref<8x80xf32, #tpu.memory_space<vmem>>, vector<1x80xf32>
    %104 = vector.extract_strided_slice %101 {offsets = [0, 0], sizes = [1, 80], strides = [1, 1]} : vector<1x160xf32> to vector<1x80xf32>
    %105 = arith.addf %103, %104 : vector<1x80xf32>
    %106 = arith.negf %105 : vector<1x80xf32>
    %107 = math.exp %106 : vector<1x80xf32>
    %cst_38 = arith.constant 1.000000e+00 : f32
    %108 = vector.broadcast %cst_38 : f32 to vector<1x80xf32>
    %109 = arith.addf %108, %107 : vector<1x80xf32>
    %110 = arith.divf %108, %109 : vector<1x80xf32>
    %111 = math.tanh %105 : vector<1x80xf32>
    %112 = vector.extract_strided_slice %110 {offsets = [0, 0], sizes = [1, 20], strides = [1, 1]} : vector<1x80xf32> to vector<1x20xf32>
    %113 = vector.extract_strided_slice %110 {offsets = [0, 20], sizes = [1, 20], strides = [1, 1]} : vector<1x80xf32> to vector<1x20xf32>
    %114 = vector.extract_strided_slice %111 {offsets = [0, 40], sizes = [1, 20], strides = [1, 1]} : vector<1x80xf32> to vector<1x20xf32>
    %115 = vector.extract_strided_slice %110 {offsets = [0, 60], sizes = [1, 20], strides = [1, 1]} : vector<1x80xf32> to vector<1x20xf32>
    %116 = arith.mulf %113, %73 : vector<1x20xf32>
    %117 = arith.mulf %112, %114 : vector<1x20xf32>
    %118 = arith.addf %116, %117 : vector<1x20xf32>
    %119 = math.tanh %118 : vector<1x20xf32>
    %120 = arith.mulf %115, %119 : vector<1x20xf32>
    %c0_39 = arith.constant 0 : index
    %c0_40 = arith.constant 0 : index
    %121 = vector.load %arg4[%c0_39, %c0_40] : memref<20x80xf32, #tpu.memory_space<vmem>>, vector<20x80xf32>
    %cst_41 = arith.constant dense<0.000000e+00> : vector<1x80xf32>
    %122 = tpu.matmul %120, %121, %cst_41 {dimension_numbers = #tpu.dot_dimension_numbers<[1], [0], [0], [1], [0, 0, 1, 1], [], []>} : vector<1x20xf32>, vector<20x80xf32>, vector<1x80xf32> -> vector<1x80xf32>
    %c0_42 = arith.constant 0 : index
    %c0_43 = arith.constant 0 : index
    %123 = vector.load %arg5[%c0_42, %c0_43] : memref<1x80xf32, #tpu.memory_space<vmem>>, vector<1x80xf32>
    %124 = arith.addf %122, %123 : vector<1x80xf32>
    %125 = vector.extract_strided_slice %101 {offsets = [0, 80], sizes = [1, 80], strides = [1, 1]} : vector<1x160xf32> to vector<1x80xf32>
    %126 = arith.addf %124, %125 : vector<1x80xf32>
    %127 = arith.negf %126 : vector<1x80xf32>
    %128 = math.exp %127 : vector<1x80xf32>
    %cst_44 = arith.constant 1.000000e+00 : f32
    %129 = vector.broadcast %cst_44 : f32 to vector<1x80xf32>
    %130 = arith.addf %129, %128 : vector<1x80xf32>
    %131 = arith.divf %129, %130 : vector<1x80xf32>
    %132 = math.tanh %126 : vector<1x80xf32>
    %133 = vector.extract_strided_slice %131 {offsets = [0, 0], sizes = [1, 20], strides = [1, 1]} : vector<1x80xf32> to vector<1x20xf32>
    %134 = vector.extract_strided_slice %131 {offsets = [0, 20], sizes = [1, 20], strides = [1, 1]} : vector<1x80xf32> to vector<1x20xf32>
    %135 = vector.extract_strided_slice %132 {offsets = [0, 40], sizes = [1, 20], strides = [1, 1]} : vector<1x80xf32> to vector<1x20xf32>
    %136 = vector.extract_strided_slice %131 {offsets = [0, 60], sizes = [1, 20], strides = [1, 1]} : vector<1x80xf32> to vector<1x20xf32>
    %137 = arith.mulf %134, %94 : vector<1x20xf32>
    %138 = arith.mulf %133, %135 : vector<1x20xf32>
    %139 = arith.addf %137, %138 : vector<1x20xf32>
    %140 = math.tanh %139 : vector<1x20xf32>
    %141 = arith.mulf %136, %140 : vector<1x20xf32>
    %142 = arith.index_cast %c2_i32 : i32 to index
    %c0_45 = arith.constant 0 : index
    %143 = vector.load %arg10[%142, %c0_45] : memref<8x20xf32, #tpu.memory_space<vmem>>, vector<1x20xf32>
    tpu.vector_store %arg10[%142, %c0_45], %141 {strides = array<i32>} : memref<8x20xf32, #tpu.memory_space<vmem>>, vector<1x20xf32>,
    %144 = tpu.concatenate %120, %141 in 1 : vector<1x20xf32>, vector<1x20xf32> -> vector<1x40xf32>
    %c3_i32 = arith.constant 3 : i32
    %c0_46 = arith.constant 0 : index
    %c0_47 = arith.constant 0 : index
    %145 = vector.load %arg2[%c0_46, %c0_47] : memref<40x160xf32, #tpu.memory_space<vmem>>, vector<40x160xf32>
    %cst_48 = arith.constant dense<0.000000e+00> : vector<1x160xf32>
    %146 = tpu.matmul %144, %145, %cst_48 {dimension_numbers = #tpu.dot_dimension_numbers<[1], [0], [0], [1], [0, 0, 1, 1], [], []>} : vector<1x40xf32>, vector<40x160xf32>, vector<1x160xf32> -> vector<1x160xf32>
    %147 = arith.index_cast %c3_i32 : i32 to index
    %c0_49 = arith.constant 0 : index
    %148 = vector.load %arg9[%147, %c0_49] : memref<8x80xf32, #tpu.memory_space<vmem>>, vector<1x80xf32>
    %149 = vector.extract_strided_slice %146 {offsets = [0, 0], sizes = [1, 80], strides = [1, 1]} : vector<1x160xf32> to vector<1x80xf32>
    %150 = arith.addf %148, %149 : vector<1x80xf32>
    %151 = arith.negf %150 : vector<1x80xf32>
    %152 = math.exp %151 : vector<1x80xf32>
    %cst_50 = arith.constant 1.000000e+00 : f32
    %153 = vector.broadcast %cst_50 : f32 to vector<1x80xf32>
    %154 = arith.addf %153, %152 : vector<1x80xf32>
    %155 = arith.divf %153, %154 : vector<1x80xf32>
    %156 = math.tanh %150 : vector<1x80xf32>
    %157 = vector.extract_strided_slice %155 {offsets = [0, 0], sizes = [1, 20], strides = [1, 1]} : vector<1x80xf32> to vector<1x20xf32>
    %158 = vector.extract_strided_slice %155 {offsets = [0, 20], sizes = [1, 20], strides = [1, 1]} : vector<1x80xf32> to vector<1x20xf32>
    %159 = vector.extract_strided_slice %156 {offsets = [0, 40], sizes = [1, 20], strides = [1, 1]} : vector<1x80xf32> to vector<1x20xf32>
    %160 = vector.extract_strided_slice %155 {offsets = [0, 60], sizes = [1, 20], strides = [1, 1]} : vector<1x80xf32> to vector<1x20xf32>
    %161 = arith.mulf %158, %118 : vector<1x20xf32>
    %162 = arith.mulf %157, %159 : vector<1x20xf32>
    %163 = arith.addf %161, %162 : vector<1x20xf32>
    %164 = math.tanh %163 : vector<1x20xf32>
    %165 = arith.mulf %160, %164 : vector<1x20xf32>
    %c0_51 = arith.constant 0 : index
    %c0_52 = arith.constant 0 : index
    %166 = vector.load %arg4[%c0_51, %c0_52] : memref<20x80xf32, #tpu.memory_space<vmem>>, vector<20x80xf32>
    %cst_53 = arith.constant dense<0.000000e+00> : vector<1x80xf32>
    %167 = tpu.matmul %165, %166, %cst_53 {dimension_numbers = #tpu.dot_dimension_numbers<[1], [0], [0], [1], [0, 0, 1, 1], [], []>} : vector<1x20xf32>, vector<20x80xf32>, vector<1x80xf32> -> vector<1x80xf32>
    %c0_54 = arith.constant 0 : index
    %c0_55 = arith.constant 0 : index
    %168 = vector.load %arg5[%c0_54, %c0_55] : memref<1x80xf32, #tpu.memory_space<vmem>>, vector<1x80xf32>
    %169 = arith.addf %167, %168 : vector<1x80xf32>
    %170 = vector.extract_strided_slice %146 {offsets = [0, 80], sizes = [1, 80], strides = [1, 1]} : vector<1x160xf32> to vector<1x80xf32>
    %171 = arith.addf %169, %170 : vector<1x80xf32>
    %172 = arith.negf %171 : vector<1x80xf32>
    %173 = math.exp %172 : vector<1x80xf32>
    %cst_56 = arith.constant 1.000000e+00 : f32
    %174 = vector.broadcast %cst_56 : f32 to vector<1x80xf32>
    %175 = arith.addf %174, %173 : vector<1x80xf32>
    %176 = arith.divf %174, %175 : vector<1x80xf32>
    %177 = math.tanh %171 : vector<1x80xf32>
    %178 = vector.extract_strided_slice %176 {offsets = [0, 0], sizes = [1, 20], strides = [1, 1]} : vector<1x80xf32> to vector<1x20xf32>
    %179 = vector.extract_strided_slice %176 {offsets = [0, 20], sizes = [1, 20], strides = [1, 1]} : vector<1x80xf32> to vector<1x20xf32>
    %180 = vector.extract_strided_slice %177 {offsets = [0, 40], sizes = [1, 20], strides = [1, 1]} : vector<1x80xf32> to vector<1x20xf32>
    %181 = vector.extract_strided_slice %176 {offsets = [0, 60], sizes = [1, 20], strides = [1, 1]} : vector<1x80xf32> to vector<1x20xf32>
    %182 = arith.mulf %179, %139 : vector<1x20xf32>
    %183 = arith.mulf %178, %180 : vector<1x20xf32>
    %184 = arith.addf %182, %183 : vector<1x20xf32>
    %185 = math.tanh %184 : vector<1x20xf32>
    %186 = arith.mulf %181, %185 : vector<1x20xf32>
    %187 = arith.index_cast %c3_i32 : i32 to index
    %c0_57 = arith.constant 0 : index
    %188 = vector.load %arg10[%187, %c0_57] : memref<8x20xf32, #tpu.memory_space<vmem>>, vector<1x20xf32>
    tpu.vector_store %arg10[%187, %c0_57], %186 {strides = array<i32>} : memref<8x20xf32, #tpu.memory_space<vmem>>, vector<1x20xf32>,
    %189 = tpu.concatenate %165, %186 in 1 : vector<1x20xf32>, vector<1x20xf32> -> vector<1x40xf32>
    %c4_i32 = arith.constant 4 : i32
    %c0_58 = arith.constant 0 : index
    %c0_59 = arith.constant 0 : index
    %190 = vector.load %arg2[%c0_58, %c0_59] : memref<40x160xf32, #tpu.memory_space<vmem>>, vector<40x160xf32>
    %cst_60 = arith.constant dense<0.000000e+00> : vector<1x160xf32>
    %191 = tpu.matmul %189, %190, %cst_60 {dimension_numbers = #tpu.dot_dimension_numbers<[1], [0], [0], [1], [0, 0, 1, 1], [], []>} : vector<1x40xf32>, vector<40x160xf32>, vector<1x160xf32> -> vector<1x160xf32>
    %192 = arith.index_cast %c4_i32 : i32 to index
    %c0_61 = arith.constant 0 : index
    %193 = vector.load %arg9[%192, %c0_61] : memref<8x80xf32, #tpu.memory_space<vmem>>, vector<1x80xf32>
    %194 = vector.extract_strided_slice %191 {offsets = [0, 0], sizes = [1, 80], strides = [1, 1]} : vector<1x160xf32> to vector<1x80xf32>
    %195 = arith.addf %193, %194 : vector<1x80xf32>
    %196 = arith.negf %195 : vector<1x80xf32>
    %197 = math.exp %196 : vector<1x80xf32>
    %cst_62 = arith.constant 1.000000e+00 : f32
    %198 = vector.broadcast %cst_62 : f32 to vector<1x80xf32>
    %199 = arith.addf %198, %197 : vector<1x80xf32>
    %200 = arith.divf %198, %199 : vector<1x80xf32>
    %201 = math.tanh %195 : vector<1x80xf32>
    %202 = vector.extract_strided_slice %200 {offsets = [0, 0], sizes = [1, 20], strides = [1, 1]} : vector<1x80xf32> to vector<1x20xf32>
    %203 = vector.extract_strided_slice %200 {offsets = [0, 20], sizes = [1, 20], strides = [1, 1]} : vector<1x80xf32> to vector<1x20xf32>
    %204 = vector.extract_strided_slice %201 {offsets = [0, 40], sizes = [1, 20], strides = [1, 1]} : vector<1x80xf32> to vector<1x20xf32>
    %205 = vector.extract_strided_slice %200 {offsets = [0, 60], sizes = [1, 20], strides = [1, 1]} : vector<1x80xf32> to vector<1x20xf32>
    %206 = arith.mulf %203, %163 : vector<1x20xf32>
    %207 = arith.mulf %202, %204 : vector<1x20xf32>
    %208 = arith.addf %206, %207 : vector<1x20xf32>
    %209 = math.tanh %208 : vector<1x20xf32>
    %210 = arith.mulf %205, %209 : vector<1x20xf32>
    %c0_63 = arith.constant 0 : index
    %c0_64 = arith.constant 0 : index
    %211 = vector.load %arg4[%c0_63, %c0_64] : memref<20x80xf32, #tpu.memory_space<vmem>>, vector<20x80xf32>
    %cst_65 = arith.constant dense<0.000000e+00> : vector<1x80xf32>
    %212 = tpu.matmul %210, %211, %cst_65 {dimension_numbers = #tpu.dot_dimension_numbers<[1], [0], [0], [1], [0, 0, 1, 1], [], []>} : vector<1x20xf32>, vector<20x80xf32>, vector<1x80xf32> -> vector<1x80xf32>
    %c0_66 = arith.constant 0 : index
    %c0_67 = arith.constant 0 : index
    %213 = vector.load %arg5[%c0_66, %c0_67] : memref<1x80xf32, #tpu.memory_space<vmem>>, vector<1x80xf32>
    %214 = arith.addf %212, %213 : vector<1x80xf32>
    %215 = vector.extract_strided_slice %191 {offsets = [0, 80], sizes = [1, 80], strides = [1, 1]} : vector<1x160xf32> to vector<1x80xf32>
    %216 = arith.addf %214, %215 : vector<1x80xf32>
    %217 = arith.negf %216 : vector<1x80xf32>
    %218 = math.exp %217 : vector<1x80xf32>
    %cst_68 = arith.constant 1.000000e+00 : f32
    %219 = vector.broadcast %cst_68 : f32 to vector<1x80xf32>
    %220 = arith.addf %219, %218 : vector<1x80xf32>
    %221 = arith.divf %219, %220 : vector<1x80xf32>
    %222 = math.tanh %216 : vector<1x80xf32>
    %223 = vector.extract_strided_slice %221 {offsets = [0, 0], sizes = [1, 20], strides = [1, 1]} : vector<1x80xf32> to vector<1x20xf32>
    %224 = vector.extract_strided_slice %221 {offsets = [0, 20], sizes = [1, 20], strides = [1, 1]} : vector<1x80xf32> to vector<1x20xf32>
    %225 = vector.extract_strided_slice %222 {offsets = [0, 40], sizes = [1, 20], strides = [1, 1]} : vector<1x80xf32> to vector<1x20xf32>
    %226 = vector.extract_strided_slice %221 {offsets = [0, 60], sizes = [1, 20], strides = [1, 1]} : vector<1x80xf32> to vector<1x20xf32>
    %227 = arith.mulf %224, %184 : vector<1x20xf32>
    %228 = arith.mulf %223, %225 : vector<1x20xf32>
    %229 = arith.addf %227, %228 : vector<1x20xf32>
    %230 = math.tanh %229 : vector<1x20xf32>
    %231 = arith.mulf %226, %230 : vector<1x20xf32>
    %232 = arith.index_cast %c4_i32 : i32 to index
    %c0_69 = arith.constant 0 : index
    %233 = vector.load %arg10[%232, %c0_69] : memref<8x20xf32, #tpu.memory_space<vmem>>, vector<1x20xf32>
    tpu.vector_store %arg10[%232, %c0_69], %231 {strides = array<i32>} : memref<8x20xf32, #tpu.memory_space<vmem>>, vector<1x20xf32>,
    %234 = tpu.concatenate %210, %231 in 1 : vector<1x20xf32>, vector<1x20xf32> -> vector<1x40xf32>
    %c5_i32 = arith.constant 5 : i32
    %c0_70 = arith.constant 0 : index
    %c0_71 = arith.constant 0 : index
    %235 = vector.load %arg2[%c0_70, %c0_71] : memref<40x160xf32, #tpu.memory_space<vmem>>, vector<40x160xf32>
    %cst_72 = arith.constant dense<0.000000e+00> : vector<1x160xf32>
    %236 = tpu.matmul %234, %235, %cst_72 {dimension_numbers = #tpu.dot_dimension_numbers<[1], [0], [0], [1], [0, 0, 1, 1], [], []>} : vector<1x40xf32>, vector<40x160xf32>, vector<1x160xf32> -> vector<1x160xf32>
    %237 = arith.index_cast %c5_i32 : i32 to index
    %c0_73 = arith.constant 0 : index
    %238 = vector.load %arg9[%237, %c0_73] : memref<8x80xf32, #tpu.memory_space<vmem>>, vector<1x80xf32>
    %239 = vector.extract_strided_slice %236 {offsets = [0, 0], sizes = [1, 80], strides = [1, 1]} : vector<1x160xf32> to vector<1x80xf32>
    %240 = arith.addf %238, %239 : vector<1x80xf32>
    %241 = arith.negf %240 : vector<1x80xf32>
    %242 = math.exp %241 : vector<1x80xf32>
    %cst_74 = arith.constant 1.000000e+00 : f32
    %243 = vector.broadcast %cst_74 : f32 to vector<1x80xf32>
    %244 = arith.addf %243, %242 : vector<1x80xf32>
    %245 = arith.divf %243, %244 : vector<1x80xf32>
    %246 = math.tanh %240 : vector<1x80xf32>
    %247 = vector.extract_strided_slice %245 {offsets = [0, 0], sizes = [1, 20], strides = [1, 1]} : vector<1x80xf32> to vector<1x20xf32>
    %248 = vector.extract_strided_slice %245 {offsets = [0, 20], sizes = [1, 20], strides = [1, 1]} : vector<1x80xf32> to vector<1x20xf32>
    %249 = vector.extract_strided_slice %246 {offsets = [0, 40], sizes = [1, 20], strides = [1, 1]} : vector<1x80xf32> to vector<1x20xf32>
    %250 = vector.extract_strided_slice %245 {offsets = [0, 60], sizes = [1, 20], strides = [1, 1]} : vector<1x80xf32> to vector<1x20xf32>
    %251 = arith.mulf %248, %208 : vector<1x20xf32>
    %252 = arith.mulf %247, %249 : vector<1x20xf32>
    %253 = arith.addf %251, %252 : vector<1x20xf32>
    %254 = math.tanh %253 : vector<1x20xf32>
    %255 = arith.mulf %250, %254 : vector<1x20xf32>
    %c0_75 = arith.constant 0 : index
    %c0_76 = arith.constant 0 : index
    %256 = vector.load %arg4[%c0_75, %c0_76] : memref<20x80xf32, #tpu.memory_space<vmem>>, vector<20x80xf32>
    %cst_77 = arith.constant dense<0.000000e+00> : vector<1x80xf32>
    %257 = tpu.matmul %255, %256, %cst_77 {dimension_numbers = #tpu.dot_dimension_numbers<[1], [0], [0], [1], [0, 0, 1, 1], [], []>} : vector<1x20xf32>, vector<20x80xf32>, vector<1x80xf32> -> vector<1x80xf32>
    %c0_78 = arith.constant 0 : index
    %c0_79 = arith.constant 0 : index
    %258 = vector.load %arg5[%c0_78, %c0_79] : memref<1x80xf32, #tpu.memory_space<vmem>>, vector<1x80xf32>
    %259 = arith.addf %257, %258 : vector<1x80xf32>
    %260 = vector.extract_strided_slice %236 {offsets = [0, 80], sizes = [1, 80], strides = [1, 1]} : vector<1x160xf32> to vector<1x80xf32>
    %261 = arith.addf %259, %260 : vector<1x80xf32>
    %262 = arith.negf %261 : vector<1x80xf32>
    %263 = math.exp %262 : vector<1x80xf32>
    %cst_80 = arith.constant 1.000000e+00 : f32
    %264 = vector.broadcast %cst_80 : f32 to vector<1x80xf32>
    %265 = arith.addf %264, %263 : vector<1x80xf32>
    %266 = arith.divf %264, %265 : vector<1x80xf32>
    %267 = math.tanh %261 : vector<1x80xf32>
    %268 = vector.extract_strided_slice %266 {offsets = [0, 0], sizes = [1, 20], strides = [1, 1]} : vector<1x80xf32> to vector<1x20xf32>
    %269 = vector.extract_strided_slice %266 {offsets = [0, 20], sizes = [1, 20], strides = [1, 1]} : vector<1x80xf32> to vector<1x20xf32>
    %270 = vector.extract_strided_slice %267 {offsets = [0, 40], sizes = [1, 20], strides = [1, 1]} : vector<1x80xf32> to vector<1x20xf32>
    %271 = vector.extract_strided_slice %266 {offsets = [0, 60], sizes = [1, 20], strides = [1, 1]} : vector<1x80xf32> to vector<1x20xf32>
    %272 = arith.mulf %269, %229 : vector<1x20xf32>
    %273 = arith.mulf %268, %270 : vector<1x20xf32>
    %274 = arith.addf %272, %273 : vector<1x20xf32>
    %275 = math.tanh %274 : vector<1x20xf32>
    %276 = arith.mulf %271, %275 : vector<1x20xf32>
    %277 = arith.index_cast %c5_i32 : i32 to index
    %c0_81 = arith.constant 0 : index
    %278 = vector.load %arg10[%277, %c0_81] : memref<8x20xf32, #tpu.memory_space<vmem>>, vector<1x20xf32>
    tpu.vector_store %arg10[%277, %c0_81], %276 {strides = array<i32>} : memref<8x20xf32, #tpu.memory_space<vmem>>, vector<1x20xf32>,
    %279 = tpu.concatenate %255, %276 in 1 : vector<1x20xf32>, vector<1x20xf32> -> vector<1x40xf32>
    %c6_i32 = arith.constant 6 : i32
    %c0_82 = arith.constant 0 : index
    %c0_83 = arith.constant 0 : index
    %280 = vector.load %arg2[%c0_82, %c0_83] : memref<40x160xf32, #tpu.memory_space<vmem>>, vector<40x160xf32>
    %cst_84 = arith.constant dense<0.000000e+00> : vector<1x160xf32>
    %281 = tpu.matmul %279, %280, %cst_84 {dimension_numbers = #tpu.dot_dimension_numbers<[1], [0], [0], [1], [0, 0, 1, 1], [], []>} : vector<1x40xf32>, vector<40x160xf32>, vector<1x160xf32> -> vector<1x160xf32>
    %282 = arith.index_cast %c6_i32 : i32 to index
    %c0_85 = arith.constant 0 : index
    %283 = vector.load %arg9[%282, %c0_85] : memref<8x80xf32, #tpu.memory_space<vmem>>, vector<1x80xf32>
    %284 = vector.extract_strided_slice %281 {offsets = [0, 0], sizes = [1, 80], strides = [1, 1]} : vector<1x160xf32> to vector<1x80xf32>
    %285 = arith.addf %283, %284 : vector<1x80xf32>
    %286 = arith.negf %285 : vector<1x80xf32>
    %287 = math.exp %286 : vector<1x80xf32>
    %cst_86 = arith.constant 1.000000e+00 : f32
    %288 = vector.broadcast %cst_86 : f32 to vector<1x80xf32>
    %289 = arith.addf %288, %287 : vector<1x80xf32>
    %290 = arith.divf %288, %289 : vector<1x80xf32>
    %291 = math.tanh %285 : vector<1x80xf32>
    %292 = vector.extract_strided_slice %290 {offsets = [0, 0], sizes = [1, 20], strides = [1, 1]} : vector<1x80xf32> to vector<1x20xf32>
    %293 = vector.extract_strided_slice %290 {offsets = [0, 20], sizes = [1, 20], strides = [1, 1]} : vector<1x80xf32> to vector<1x20xf32>
    %294 = vector.extract_strided_slice %291 {offsets = [0, 40], sizes = [1, 20], strides = [1, 1]} : vector<1x80xf32> to vector<1x20xf32>
    %295 = vector.extract_strided_slice %290 {offsets = [0, 60], sizes = [1, 20], strides = [1, 1]} : vector<1x80xf32> to vector<1x20xf32>
    %296 = arith.mulf %293, %253 : vector<1x20xf32>
    %297 = arith.mulf %292, %294 : vector<1x20xf32>
    %298 = arith.addf %296, %297 : vector<1x20xf32>
    %299 = math.tanh %298 : vector<1x20xf32>
    %300 = arith.mulf %295, %299 : vector<1x20xf32>
    %c0_87 = arith.constant 0 : index
    %c0_88 = arith.constant 0 : index
    %301 = vector.load %arg4[%c0_87, %c0_88] : memref<20x80xf32, #tpu.memory_space<vmem>>, vector<20x80xf32>
    %cst_89 = arith.constant dense<0.000000e+00> : vector<1x80xf32>
    %302 = tpu.matmul %300, %301, %cst_89 {dimension_numbers = #tpu.dot_dimension_numbers<[1], [0], [0], [1], [0, 0, 1, 1], [], []>} : vector<1x20xf32>, vector<20x80xf32>, vector<1x80xf32> -> vector<1x80xf32>
    %c0_90 = arith.constant 0 : index
    %c0_91 = arith.constant 0 : index
    %303 = vector.load %arg5[%c0_90, %c0_91] : memref<1x80xf32, #tpu.memory_space<vmem>>, vector<1x80xf32>
    %304 = arith.addf %302, %303 : vector<1x80xf32>
    %305 = vector.extract_strided_slice %281 {offsets = [0, 80], sizes = [1, 80], strides = [1, 1]} : vector<1x160xf32> to vector<1x80xf32>
    %306 = arith.addf %304, %305 : vector<1x80xf32>
    %307 = arith.negf %306 : vector<1x80xf32>
    %308 = math.exp %307 : vector<1x80xf32>
    %cst_92 = arith.constant 1.000000e+00 : f32
    %309 = vector.broadcast %cst_92 : f32 to vector<1x80xf32>
    %310 = arith.addf %309, %308 : vector<1x80xf32>
    %311 = arith.divf %309, %310 : vector<1x80xf32>
    %312 = math.tanh %306 : vector<1x80xf32>
    %313 = vector.extract_strided_slice %311 {offsets = [0, 0], sizes = [1, 20], strides = [1, 1]} : vector<1x80xf32> to vector<1x20xf32>
    %314 = vector.extract_strided_slice %311 {offsets = [0, 20], sizes = [1, 20], strides = [1, 1]} : vector<1x80xf32> to vector<1x20xf32>
    %315 = vector.extract_strided_slice %312 {offsets = [0, 40], sizes = [1, 20], strides = [1, 1]} : vector<1x80xf32> to vector<1x20xf32>
    %316 = vector.extract_strided_slice %311 {offsets = [0, 60], sizes = [1, 20], strides = [1, 1]} : vector<1x80xf32> to vector<1x20xf32>
    %317 = arith.mulf %314, %274 : vector<1x20xf32>
    %318 = arith.mulf %313, %315 : vector<1x20xf32>
    %319 = arith.addf %317, %318 : vector<1x20xf32>
    %320 = math.tanh %319 : vector<1x20xf32>
    %321 = arith.mulf %316, %320 : vector<1x20xf32>
    %322 = arith.index_cast %c6_i32 : i32 to index
    %c0_93 = arith.constant 0 : index
    %323 = vector.load %arg10[%322, %c0_93] : memref<8x20xf32, #tpu.memory_space<vmem>>, vector<1x20xf32>
    tpu.vector_store %arg10[%322, %c0_93], %321 {strides = array<i32>} : memref<8x20xf32, #tpu.memory_space<vmem>>, vector<1x20xf32>,
    %324 = tpu.concatenate %300, %321 in 1 : vector<1x20xf32>, vector<1x20xf32> -> vector<1x40xf32>
    %c7_i32 = arith.constant 7 : i32
    %c0_94 = arith.constant 0 : index
    %c0_95 = arith.constant 0 : index
    %325 = vector.load %arg2[%c0_94, %c0_95] : memref<40x160xf32, #tpu.memory_space<vmem>>, vector<40x160xf32>
    %cst_96 = arith.constant dense<0.000000e+00> : vector<1x160xf32>
    %326 = tpu.matmul %324, %325, %cst_96 {dimension_numbers = #tpu.dot_dimension_numbers<[1], [0], [0], [1], [0, 0, 1, 1], [], []>} : vector<1x40xf32>, vector<40x160xf32>, vector<1x160xf32> -> vector<1x160xf32>
    %327 = arith.index_cast %c7_i32 : i32 to index
    %c0_97 = arith.constant 0 : index
    %328 = vector.load %arg9[%327, %c0_97] : memref<8x80xf32, #tpu.memory_space<vmem>>, vector<1x80xf32>
    %329 = vector.extract_strided_slice %326 {offsets = [0, 0], sizes = [1, 80], strides = [1, 1]} : vector<1x160xf32> to vector<1x80xf32>
    %330 = arith.addf %328, %329 : vector<1x80xf32>
    %331 = arith.negf %330 : vector<1x80xf32>
    %332 = math.exp %331 : vector<1x80xf32>
    %cst_98 = arith.constant 1.000000e+00 : f32
    %333 = vector.broadcast %cst_98 : f32 to vector<1x80xf32>
    %334 = arith.addf %333, %332 : vector<1x80xf32>
    %335 = arith.divf %333, %334 : vector<1x80xf32>
    %336 = math.tanh %330 : vector<1x80xf32>
    %337 = vector.extract_strided_slice %335 {offsets = [0, 0], sizes = [1, 20], strides = [1, 1]} : vector<1x80xf32> to vector<1x20xf32>
    %338 = vector.extract_strided_slice %335 {offsets = [0, 20], sizes = [1, 20], strides = [1, 1]} : vector<1x80xf32> to vector<1x20xf32>
    %339 = vector.extract_strided_slice %336 {offsets = [0, 40], sizes = [1, 20], strides = [1, 1]} : vector<1x80xf32> to vector<1x20xf32>
    %340 = vector.extract_strided_slice %335 {offsets = [0, 60], sizes = [1, 20], strides = [1, 1]} : vector<1x80xf32> to vector<1x20xf32>
    %341 = arith.mulf %338, %298 : vector<1x20xf32>
    %342 = arith.mulf %337, %339 : vector<1x20xf32>
    %343 = arith.addf %341, %342 : vector<1x20xf32>
    %344 = math.tanh %343 : vector<1x20xf32>
    %345 = arith.mulf %340, %344 : vector<1x20xf32>
    %c0_99 = arith.constant 0 : index
    %c0_100 = arith.constant 0 : index
    %346 = vector.load %arg4[%c0_99, %c0_100] : memref<20x80xf32, #tpu.memory_space<vmem>>, vector<20x80xf32>
    %cst_101 = arith.constant dense<0.000000e+00> : vector<1x80xf32>
    %347 = tpu.matmul %345, %346, %cst_101 {dimension_numbers = #tpu.dot_dimension_numbers<[1], [0], [0], [1], [0, 0, 1, 1], [], []>} : vector<1x20xf32>, vector<20x80xf32>, vector<1x80xf32> -> vector<1x80xf32>
    %c0_102 = arith.constant 0 : index
    %c0_103 = arith.constant 0 : index
    %348 = vector.load %arg5[%c0_102, %c0_103] : memref<1x80xf32, #tpu.memory_space<vmem>>, vector<1x80xf32>
    %349 = arith.addf %347, %348 : vector<1x80xf32>
    %350 = vector.extract_strided_slice %326 {offsets = [0, 80], sizes = [1, 80], strides = [1, 1]} : vector<1x160xf32> to vector<1x80xf32>
    %351 = arith.addf %349, %350 : vector<1x80xf32>
    %352 = arith.negf %351 : vector<1x80xf32>
    %353 = math.exp %352 : vector<1x80xf32>
    %cst_104 = arith.constant 1.000000e+00 : f32
    %354 = vector.broadcast %cst_104 : f32 to vector<1x80xf32>
    %355 = arith.addf %354, %353 : vector<1x80xf32>
    %356 = arith.divf %354, %355 : vector<1x80xf32>
    %357 = math.tanh %351 : vector<1x80xf32>
    %358 = vector.extract_strided_slice %356 {offsets = [0, 0], sizes = [1, 20], strides = [1, 1]} : vector<1x80xf32> to vector<1x20xf32>
    %359 = vector.extract_strided_slice %356 {offsets = [0, 20], sizes = [1, 20], strides = [1, 1]} : vector<1x80xf32> to vector<1x20xf32>
    %360 = vector.extract_strided_slice %357 {offsets = [0, 40], sizes = [1, 20], strides = [1, 1]} : vector<1x80xf32> to vector<1x20xf32>
    %361 = vector.extract_strided_slice %356 {offsets = [0, 60], sizes = [1, 20], strides = [1, 1]} : vector<1x80xf32> to vector<1x20xf32>
    %362 = arith.mulf %359, %319 : vector<1x20xf32>
    %363 = arith.mulf %358, %360 : vector<1x20xf32>
    %364 = arith.addf %362, %363 : vector<1x20xf32>
    %365 = math.tanh %364 : vector<1x20xf32>
    %366 = arith.mulf %361, %365 : vector<1x20xf32>
    %367 = arith.index_cast %c7_i32 : i32 to index
    %c0_105 = arith.constant 0 : index
    %368 = vector.load %arg10[%367, %c0_105] : memref<8x20xf32, #tpu.memory_space<vmem>>, vector<1x20xf32>
    tpu.vector_store %arg10[%367, %c0_105], %366 {strides = array<i32>} : memref<8x20xf32, #tpu.memory_space<vmem>>, vector<1x20xf32>,
    %369 = tpu.concatenate %345, %366 in 1 : vector<1x20xf32>, vector<1x20xf32> -> vector<1x40xf32>
    %c8_i32 = arith.constant 8 : i32
    %c0_106 = arith.constant 0 : index
    %c0_107 = arith.constant 0 : index
    %370 = vector.load %arg10[%c0_106, %c0_107] : memref<8x20xf32, #tpu.memory_space<vmem>>, vector<8x20xf32>
    %c0_108 = arith.constant 0 : index
    %c0_109 = arith.constant 0 : index
    %371 = vector.load %arg6[%c0_108, %c0_109] : memref<20x2xf32, #tpu.memory_space<vmem>>, vector<20x2xf32>
    %cst_110 = arith.constant dense<0.000000e+00> : vector<8x2xf32>
    %372 = tpu.matmul %370, %371, %cst_110 {dimension_numbers = #tpu.dot_dimension_numbers<[1], [0], [0], [1], [0, 0, 1, 1], [], []>} : vector<8x20xf32>, vector<20x2xf32>, vector<8x2xf32> -> vector<8x2xf32>
    %c0_111 = arith.constant 0 : index
    %c0_112 = arith.constant 0 : index
    %373 = vector.load %arg7[%c0_111, %c0_112] : memref<1x2xf32, #tpu.memory_space<vmem>>, vector<1x2xf32>
    %374 = vector.broadcast %373 : vector<1x2xf32> to vector<8x2xf32>
    %375 = arith.addf %372, %374 : vector<8x2xf32>
    %c0_113 = arith.constant 0 : index
    %c0_114 = arith.constant 0 : index
    %376 = vector.load %arg8[%c0_113, %c0_114] : memref<8x2xf32, #tpu.memory_space<vmem>>, vector<8x2xf32>
    tpu.vector_store %arg8[%c0_113, %c0_114], %375 {strides = array<i32>} : memref<8x2xf32, #tpu.memory_space<vmem>>, vector<8x2xf32>,
    return
  }
}

</mosaic_0001>

<bundles_post_ra>
// kernel: model_forward.1
= control target key start
LH: loop header
LB: loop body
LE: loop exit
PB: predicated region body
PF: predicated region fallthrough
CT: control target
= control target key end

     0   :  { %13 = vsyncpa [#allocation5], 0  ;;  %s3009_s0 = inlined_call_operand.vmem [shape: f32[8,36], index: 0, kind: input, shape index: {}]   ;;  %s3010_s1 = inlined_call_operand.vmem [shape: f32[36,80], index: 1, kind: input, shape index: {}]   ;;  %s3011_s2 = inlined_call_operand.hbm [shape: f32[40,160], index: 2, kind: input, shape index: {}]   ;;  %s3012_s3 = inlined_call_operand.vmem [shape: f32[1,80], index: 3, kind: input, shape index: {}]   ;;  %s3013_s4 = inlined_call_operand.hbm [shape: f32[20,80], index: 4, kind: input, shape index: {}]   ;;  %s3014_s5 = inlined_call_operand.vmem [shape: f32[1,80], index: 5, kind: input, shape index: {}]   ;;  %s3015_s6 = inlined_call_operand.vmem [shape: f32[20,2], index: 6, kind: input, shape index: {}]   ;;  %s3016_s7 = inlined_call_operand.vmem [shape: f32[1,2], index: 7, kind: input, shape index: {}]   ;;  %s3017_s8 = inlined_call_operand.vmem [shape: f32[8,2], index: 8, kind: output, shape index: {}]  }
   0x1   :  { %14 = vsyncpa [#allocation7], 0  ;;  %s2490_s27 = smov [#allocation4]  }
   0x2   :  { %s24_s28 = sshll.u32 %s2490_s27, 4  ;;  %s25_s28 = int_to_ptr.vmem [resolvable:$true] %s24_s28 }
   0x3   :  { %s2454_s29 = scalar_lea.vmem %s25_s28, 1280  ;;  %p2459_p1 = scmp.lt.s32.totalorder %s25_s28, %s25_s28 }
   0x4   :  { %p2455_p0 = scmp.ne.s32.totalorder %s25_s28, %s2454_s29  ;;  %p2460_p2 = scmp.lt.s32.totalorder %s2454_s29, %s2454_s29 }
   0x6   :  { %p2461_p3 = por %p2460_p2, %p2459_p1 }
   0x8   :  { %p2462_p4 = pnand %p2461_p3, %p2455_p0 }
   0xa   :  { %2465 = shalt.err (!%p2462_p4)
}
   0xb   :  { %s2491_s30 = smov 256   ;;  %s2492_s9 = smov 16  }
   0xc   :  { %30 = dma.hbm_to_vmem [thread:$0]  %s3011_s2, 1280, %s25_s28, [#allocation5], %s2491_s30, %s2491_s30, %s2492_s9  }
   0xd   :  { %s2493_s12 = smov [#allocation6]  }
   0xe   :  { %s38_s13 = sshll.u32 %s2493_s12, 4  ;;  %s39_s13 = int_to_ptr.vmem [resolvable:$true] %s38_s13 }
   0xf   :  { %s2474_s14 = scalar_lea.vmem %s39_s13, 384  ;;  %p2479_p6 = scmp.lt.s32.totalorder %s39_s13, %s39_s13 }
  0x10   :  { %p2475_p5 = scmp.ne.s32.totalorder %s39_s13, %s2474_s14  ;;  %p2480_p7 = scmp.lt.s32.totalorder %s2474_s14, %s2474_s14 }
  0x12   :  { %p2481_p8 = por %p2480_p7, %p2479_p6 }
  0x14   :  { %p2482_p9 = pnand %p2481_p8, %p2475_p5 }
  0x16   :  { %2485 = shalt.err (!%p2482_p9)
}
  0x17   :  { %s2494_s15 = smov 128   ;;  %s2495_s16 = smov 8  }
  0x18   :  { %44 = dma.hbm_to_vmem [thread:$0]  %s3013_s4, 384, %s39_s13, [#allocation7], %s2494_s15, %s2494_s15, %s2495_s16  }
  0x19   :  { %2486 = dma.done.wait [#allocation5], 1280  }
  0x1a   :  { %2487 = vsyncadd [#allocation5], 4294966016 }
  0x1b   :  { %2488 = dma.done.wait [#allocation7], 384  }
  0x1c   :  { %2489 = vsyncadd [#allocation7], 4294966912  ;;  %v2496_v0 = vmov 0.0   ;;  %vm2497_vm0 = vmmov 0   ;;  %vm74_vm1 = vcmask 1043456   ;;  %v61_v2 = vld [vmem:[%s3010_s1 + $0x18] sm:$0xff] }
  0x1d   :  { %2211 = vmatprep.subr.mxu0 %v2496_v0  ;;  %2221 = vmatprep.mubr.msk.f32.mxu0 %vm2497_vm0, %v2496_v0  ;;  %v62_v1 = vld [vmem:[%s3010_s1 + $0x20] sm:$0xf]  ;;  %v2565_v3 = vld [vmem:[#allocation4 + $0x48] sm:$0xff]  ;;  %v60_v4 = vld [vmem:[%s3010_s1 + $0x10] sm:$0xff]  ;;  %vm70_vm2 = vcmask 293888   ;;  %vm148_vm3 = vcmask 654336  }
  0x1e   :  { %228 = vmatprep.mubr.f32.mxu1 %v2496_v0  ;;  %2212 = vmatpush3.msk.msra.mxu0 %vm74_vm1, %v62_v1  ;;  %v2572_v5 = vld [vmem:[#allocation4 + $0x40] sm:$0xff]  ;;  %v2574_v6 = vld [vmem:[#allocation4 + $0x38] sm:$0xff]  ;;  %v2577_v7 = vld [vmem:[#allocation4 + $0x30] sm:$0xff]  ;;  %s2498_s29 = smov 88   ;;  %s2500_s30 = smov 48   ;;  %vm268_vm4 = vcmask 162816  }
  0x1f   :  { %2213 = vmatprep.subr.mxu0 %v2496_v0  ;;  %186 = vmatprep.subr.mxu1 %v2565_v3  ;;  %v2579_v8 = vld [vmem:[#allocation4 + $0x28] sm:$0xff]  ;;  %v59_v9 = vld [vmem:[%s3010_s1 + $0x8] sm:$0xff]  ;;  %v2586_v10 = vld [vmem:[#allocation4 + $0x20] sm:$0xff]  ;;  %s2501_s9 = smov 40   ;;  %s2502_s10 = smov 68   ;;  %vm350_vm5 = vcmask 392192  }
  0x20   :  { %2214 = vmatpush3.msra.mxu0 %v61_v2  ;;  %187 = vmatpush1.msra.mxu1 %v2572_v5  ;;  %v2589_v11 = vld [vmem:[#allocation4 + $0x18] sm:$0xff]  ;;  %v58_v12 = vld [vmem:[%s3010_s1] sm:$0xff]  ;;  %v2602_v15 = vld [vmem:[#allocation4 + $0x8] sm:$0xff]  ;;  %vm160_vm6 = vcmask 326656   ;;  %vm382_vm7 = vcmask 155648   ;;  %vm2116_vm8 = vcmask 15360  }
  0x21   :  { %2215 = vmatprep.subr.mxu0 %v2496_v0  ;;  %188 = vmatprep.subr.mxu1 %v2574_v6  ;;  %v2596_v13 = vld [vmem:[#allocation4 + $0x10] sm:$0xff]  ;;  %v2606_v16 = vld [vmem:[#allocation4] sm:$0xff]  ;;  %v2636_v35 = vld [vmem:[#allocation6 + $0x8] sm:$0xff] }
  0x22   :  { %2216 = vmatpush3.msra.mxu0 %v60_v4  ;;  %189 = vmatpush1.msra.mxu1 %v2577_v7  ;;  %v57_v14 = vld [vmem:[%s3009_s0] sm:$0xff]  ;;  %v263_v34 = vld [vmem:[#allocation6 + $0x10] sm:$0xf] }
  0x23   :  { %2217 = vmatprep.subr.mxu0 %v2496_v0  ;;  %190 = vmatprep.subr.mxu1 %v2579_v8  ;;  %v2124_v17 = vld [vmem:[%s3012_s3] ss:$0 sm:$0xff]  ;;  %s2499_s3 = smov 20  }
  0x24   :  { %2218 = vmatpush3.msra.mxu0 %v59_v9  ;;  %191 = vmatpush1.msra.mxu1 %v2586_v10  ;;  %v2640_v36 = vld [vmem:[#allocation6] sm:$0xff] }
  0x25   :  { %2219 = vmatprep.subr.mxu0 %v2496_v0  ;;  %192 = vmatprep.subr.mxu1 %v2589_v11  ;;  %v264_v42 = vld [vmem:[%s3014_s5] sm:$0x1] }
  0x26   :  { %2220 = vmatpush3.msra.mxu0 %v58_v12  ;;  %193 = vmatpush1.msra.mxu1 %v2596_v13 }
  0x27   :  { %2222 = vmatmul.mubr.msk.f32.vlgmr.msra.gmra.mxu0 %vm70_vm2, %v57_v14  ;;  %194 = vmatprep.subr.mxu1 %v2602_v15 }
  0x28   :  { %195 = vmatpush1.msra.mxu1 %v2606_v16  ;;  %2224 = vmatprep.subr.mxu0 %v2496_v0 }
  0x29   :  { %229 = vmatmul.mubr.f32.vlgmr.msra.gmra.mxu1 %v2496_v0  ;;  %2230 = vmatprep.mubr.msk.f32.mxu0 %vm2497_vm0, %v2496_v0 }
  0x2a   :  { %424 = vmatprep.subr.mxu1 %v2565_v3  ;;  %466 = vmatprep.mubr.f32.mxu1 %v2496_v0 }
  0x2b   :  { %425 = vmatpush1.msra.mxu1 %v2572_v5  ;;  %2225 = vmatpush3.msk.msra.mxu0 %vm74_vm1, %v263_v34 }
  0x2c   :  { %426 = vmatprep.subr.mxu1 %v2574_v6  ;;  %2226 = vmatprep.subr.mxu0 %v2496_v0 }
  0x2d   :  { %427 = vmatpush1.msra.mxu1 %v2577_v7  ;;  %2227 = vmatpush3.msra.mxu0 %v2636_v35 }
  0x2e   :  { %428 = vmatprep.subr.mxu1 %v2579_v8  ;;  %2228 = vmatprep.subr.mxu0 %v2496_v0 }
  0x2f   :  { %429 = vmatpush1.msra.mxu1 %v2586_v10  ;;  %2229 = vmatpush3.msra.mxu0 %v2640_v36 }
  0x30   :  { %430 = vmatprep.subr.mxu1 %v2589_v11  ;;  %2233 = vmatprep.subr.mxu0 %v2496_v0 }
  0x31   :  { %431 = vmatpush1.msra.mxu1 %v2596_v13 }
  0x32   :  { %432 = vmatprep.subr.mxu1 %v2602_v15 }
  0x33   :  { %433 = vmatpush1.msra.mxu1 %v2606_v16 }
  0x34   :  { %659 = vmatprep.subr.mxu1 %v2565_v3 }
  0xe7   :  { %v144_v18 = vpop.f32.mrf.mxu0 }
  0xe8   :  { %v145_v19 = vadd.f32 %v2124_v17, %v144_v18 }
  0xe9   :  { %v2223_v20 = vpop.f32.mrf.mxu0  ;;  %v230_v21 = vpop.f32.mrf.mxu1 }
  0xea   :  { %149 = vst.msk [vmem:[#allocation2] sm:$0xff] %vm148_vm3, %v145_v19 }
  0xeb   :  { %v232_v40 = vpop.f32.mrf.mxu1 }
  0xf1   :  { %v235_v22 = vld [vmem:[#allocation2] sm:$0x1]  ;;  %v473_v4 = vld [vmem:[#allocation2 + $0x1] sm:$0x1] }
  0xf2   :  { %v236_v23 = vadd.f32 %v235_v22, %v230_v21 }
  0xf4   :  { %2318 = vtanh.f32 %v236_v23  ;;  %v2127_v25 = vmul.f32 -1.442695, %v236_v23 }
  0xf6   :  { %2320 = vpow2.f32 %v2127_v25  ;;  %v501_v25 = vld [vmem:[#allocation6 + $0x10] sm:$0xf] }
 0x101   :  { %v2319_v24 = vpop.eup %2318 }
 0x102   :  { %246 = vrot.lane.b32.xlu0 %v2319_v24, %s2498_s29 }
 0x103   :  { %v2321_v26 = vpop.eup %2320 }
 0x104   :  { %v240_v27 = vadd.f32 1.0, %v2321_v26 }
 0x106   :  { %2322 = vrcp.f32 %v240_v27 }
 0x113   :  { %v2323_v28 = vpop.eup %2322 }
 0x114   :  { %v244_v31 = vmul.f32 0.0, %v2323_v28 }
 0x174   :  { %v247_v29 = vpop.permute.xlu0 %246 }
 0x175   :  { %v249_v30 = vmul.f32 %v2323_v28, %v247_v29 }
 0x177   :  { %251 = vrot.lane.b32.xlu0 %v249_v30, %s2499_s3 }
 0x17b   :  { %346 = vrot.lane.b32.xlu0 %v230_v21, %s2500_s30 }
 0x1e9   :  { %v252_v32 = vpop.permute.xlu0 %251 }
 0x1ea   :  { %v2633_v33 = vadd.f32 %v252_v32, %v244_v31  ;;  %v502_v31 = vld [vmem:[%s3014_s5] sm:$0x1] }
 0x1ec   :  { %2324 = vtanh.f32 %v2633_v33 }
 0x1ed   :  { %v347_v45 = vpop.permute.xlu0 %346 }
 0x1f9   :  { %v2325_v37 = vpop.eup %2324 }
 0x1fa   :  { %257 = vrot.lane.b32.xlu1 %v2325_v37, %s2501_s9 }
 0x26c   :  { %v258_v38 = vpop.permute.xlu1 %257 }
 0x26d   :  { %v260_v39 = vmul.f32 %v2323_v28, %v258_v38 }
 0x26f   :  { %266 = vrot.lane.b32.xlu1 %v260_v39, %s2502_s10 }
 0x273   :  { %348 = vrot.lane.b32.xlu1 %v232_v40, %s2500_s30 }
 0x2e1   :  { %v267_v41 = vpop.permute.xlu1 %266 }
 0x2e2   :  { %2231 = vmatmul.mubr.msk.f32.vlgmr.msra.gmra.mxu0 %vm268_vm4, %v267_v41 }
 0x2e3   :  { %2239 = vmatprep.mubr.msk.f32.mxu0 %vm2497_vm0, %v2496_v0  ;;  %2234 = vmatpush3.msk.msra.mxu0 %vm74_vm1, %v501_v25 }
 0x2e4   :  { %2235 = vmatprep.subr.mxu0 %v2496_v0 }
 0x2e5   :  { %v349_v43 = vpop.permute.xlu1 %348  ;;  %2236 = vmatpush3.msra.mxu0 %v2636_v35 }
 0x2e6   :  { %v351_v47 = vsel %vm350_vm5, %v347_v45, %v349_v43  ;;  %2237 = vmatprep.subr.mxu0 %v2496_v0 }
 0x2e7   :  { %2238 = vmatpush3.msra.mxu0 %v2640_v36 }
 0x2e8   :  { %2242 = vmatprep.subr.mxu0 %v2496_v0 }
 0x3a2   :  { %v340_v44 = vpop.f32.mrf.mxu0 }
 0x3a3   :  { %v341_v46 = vadd.f32 %v340_v44, %v264_v42 }
 0x3a4   :  { %v2232_v48 = vpop.f32.mrf.mxu0 }
 0x3a5   :  { %v353_v49 = vadd.f32 %v351_v47, %v341_v46 }
 0x3a7   :  { %2326 = vtanh.f32 %v353_v49  ;;  %v2130_v51 = vmul.f32 -1.442695, %v353_v49 }
 0x3a9   :  { %2328 = vpow2.f32 %v2130_v51 }
 0x3b4   :  { %v2327_v50 = vpop.eup %2326 }
 0x3b5   :  { %363 = vrot.lane.b32.xlu0 %v2327_v50, %s2498_s29 }
 0x3b6   :  { %v2329_v52 = vpop.eup %2328 }
 0x3b7   :  { %v357_v53 = vadd.f32 1.0, %v2329_v52 }
 0x3b9   :  { %2330 = vrcp.f32 %v357_v53 }
 0x3c6   :  { %v2331_v54 = vpop.eup %2330 }
 0x3c7   :  { %v361_v57 = vmul.f32 0.0, %v2331_v54 }
 0x427   :  { %v364_v55 = vpop.permute.xlu0 %363 }
 0x428   :  { %v366_v56 = vmul.f32 %v2331_v54, %v364_v55 }
 0x42a   :  { %368 = vrot.lane.b32.xlu1 %v366_v56, %s2499_s3 }
 0x49c   :  { %v369_v58 = vpop.permute.xlu1 %368 }
 0x49d   :  { %v2658_v59 = vadd.f32 %v369_v58, %v361_v57  ;;  %v708_v57 = vld [vmem:[#allocation2 + $0x2] sm:$0x1] }
 0x49f   :  { %2332 = vtanh.f32 %v2658_v59 }
 0x4ac   :  { %v2333_v60 = vpop.eup %2332 }
 0x4ad   :  { %374 = vrot.lane.b32.xlu0 %v2333_v60, %s2501_s9 }
 0x51f   :  { %v375_v61 = vpop.permute.xlu0 %374 }
 0x520   :  { %v2662_v62 = vmul.f32 %v2331_v54, %v375_v61 }
 0x522   :  { %385 = vrot.lane.b32.xlu1 %v2662_v62, %s2498_s29 }
 0x594   :  { %v386_v63 = vpop.permute.xlu1 %385 }
 0x595   :  { %v388_v1 = vsel %vm268_vm4, %v267_v41, %v386_v63 }
 0x596   :  { %2131 = vmatmul.mubr.msk.f32.vlgmr.msra.gmra.mxu1 %vm160_vm6, %v388_v1 }
 0x597   :  { %660 = vmatpush1.msra.mxu1 %v2572_v5  ;;  %701 = vmatprep.mubr.f32.mxu1 %v2496_v0 }
 0x598   :  { %661 = vmatprep.subr.mxu1 %v2574_v6 }
 0x599   :  { %662 = vmatpush1.msra.mxu1 %v2577_v7 }
 0x59a   :  { %663 = vmatprep.subr.mxu1 %v2579_v8 }
 0x59b   :  { %664 = vmatpush1.msra.mxu1 %v2586_v10 }
 0x59c   :  { %665 = vmatprep.subr.mxu1 %v2589_v11 }
 0x59d   :  { %666 = vmatpush1.msra.mxu1 %v2596_v13 }
 0x59e   :  { %667 = vmatprep.subr.mxu1 %v2602_v15 }
 0x59f   :  { %668 = vmatpush1.msra.mxu1 %v2606_v16 }
 0x5a0   :  { %2251 = vmatprep.subr.mxu1 %v2496_v0 }
 0x656   :  { %v468_v2 = vpop.f32.mrf.mxu1 }
 0x657   :  { %v474_v9 = vadd.f32 %v473_v4, %v468_v2 }
 0x658   :  { %v470_v29 = vpop.f32.mrf.mxu1 }
 0x659   :  { %2334 = vtanh.f32 %v474_v9  ;;  %v2132_v14 = vmul.f32 -1.442695, %v474_v9 }
 0x65b   :  { %2336 = vpow2.f32 %v2132_v14 }
 0x666   :  { %v2335_v12 = vpop.eup %2334 }
 0x667   :  { %484 = vrot.lane.b32.xlu0 %v2335_v12, %s2498_s29 }
 0x668   :  { %v2337_v17 = vpop.eup %2336 }
 0x669   :  { %v478_v18 = vadd.f32 1.0, %v2337_v17  ;;  %v736_v17 = vld [vmem:[#allocation6 + $0x10] sm:$0xf] }
 0x66b   :  { %2338 = vrcp.f32 %v478_v18 }
 0x678   :  { %v2339_v19 = vpop.eup %2338 }
 0x679   :  { %v482_v22 = vmul.f32 %v2339_v19, %v2633_v33 }
 0x6d9   :  { %v485_v20 = vpop.permute.xlu0 %484 }
 0x6da   :  { %v487_v21 = vmul.f32 %v2339_v19, %v485_v20 }
 0x6dc   :  { %489 = vrot.lane.b32.xlu1 %v487_v21, %s2499_s3 }
 0x74e   :  { %v490_v23 = vpop.permute.xlu1 %489 }
 0x74f   :  { %v2682_v24 = vadd.f32 %v490_v23, %v482_v22  ;;  %v737_v23 = vld [vmem:[%s3014_s5] sm:$0x1] }
 0x751   :  { %2340 = vtanh.f32 %v2682_v24 }
 0x75e   :  { %v2341_v26 = vpop.eup %2340 }
 0x75f   :  { %495 = vrot.lane.b32.xlu0 %v2341_v26, %s2501_s9 }
 0x763   :  { %583 = vrot.lane.b32.xlu0 %v468_v2, %s2500_s30 }
 0x7d1   :  { %v496_v27 = vpop.permute.xlu0 %495 }
 0x7d2   :  { %v498_v28 = vmul.f32 %v2339_v19, %v496_v27 }
 0x7d4   :  { %504 = vrot.lane.b32.xlu1 %v498_v28, %s2502_s10 }
 0x7d5   :  { %v584_v34 = vpop.permute.xlu0 %583 }
 0x7d8   :  { %585 = vrot.lane.b32.xlu1 %v470_v29, %s2500_s30 }
 0x846   :  { %v505_v30 = vpop.permute.xlu1 %504 }
 0x847   :  { %2240 = vmatmul.mubr.msk.f32.vlgmr.msra.gmra.mxu0 %vm268_vm4, %v505_v30 }
 0x848   :  { %2248 = vmatprep.mubr.msk.f32.mxu0 %vm2497_vm0, %v2496_v0  ;;  %2243 = vmatpush3.msk.msra.mxu0 %vm74_vm1, %v736_v17 }
 0x849   :  { %2244 = vmatprep.subr.mxu0 %v2496_v0 }
 0x84a   :  { %v586_v32 = vpop.permute.xlu1 %585  ;;  %2245 = vmatpush3.msra.mxu0 %v2636_v35 }
 0x84b   :  { %v587_v38 = vsel %vm350_vm5, %v584_v34, %v586_v32  ;;  %2246 = vmatprep.subr.mxu0 %v2496_v0 }
 0x84c   :  { %2247 = vmatpush3.msra.mxu0 %v2640_v36 }
 0x84d   :  { %894 = vmatprep.subr.mxu0 %v2565_v3 }
 0x907   :  { %v577_v33 = vpop.f32.mrf.mxu0 }
 0x908   :  { %v578_v37 = vadd.f32 %v577_v33, %v502_v31 }
 0x909   :  { %v2241_v39 = vpop.f32.mrf.mxu0 }
 0x90a   :  { %v589_v40 = vadd.f32 %v587_v38, %v578_v37 }
 0x90c   :  { %2342 = vtanh.f32 %v589_v40  ;;  %v2135_v42 = vmul.f32 -1.442695, %v589_v40 }
 0x90e   :  { %2344 = vpow2.f32 %v2135_v42 }
 0x919   :  { %v2343_v41 = vpop.eup %2342 }
 0x91a   :  { %599 = vrot.lane.b32.xlu0 %v2343_v41, %s2498_s29 }
 0x91b   :  { %v2345_v43 = vpop.eup %2344 }
 0x91c   :  { %v593_v44 = vadd.f32 1.0, %v2345_v43 }
 0x91e   :  { %2346 = vrcp.f32 %v593_v44 }
 0x92b   :  { %v2347_v45 = vpop.eup %2346 }
 0x92c   :  { %v597_v48 = vmul.f32 %v2347_v45, %v2658_v59 }
 0x98c   :  { %v600_v46 = vpop.permute.xlu0 %599 }
 0x98d   :  { %v602_v47 = vmul.f32 %v2347_v45, %v600_v46 }
 0x98f   :  { %604 = vrot.lane.b32.xlu1 %v602_v47, %s2499_s3 }
 0xa01   :  { %v605_v49 = vpop.permute.xlu1 %604 }
 0xa02   :  { %v2705_v50 = vadd.f32 %v605_v49, %v597_v48  ;;  %v943_v49 = vld [vmem:[#allocation2 + $0x3] sm:$0x1] }
 0xa04   :  { %2348 = vtanh.f32 %v2705_v50 }
 0xa11   :  { %v2349_v51 = vpop.eup %2348 }
 0xa12   :  { %610 = vrot.lane.b32.xlu0 %v2349_v51, %s2501_s9 }
 0xa84   :  { %v611_v52 = vpop.permute.xlu0 %610 }
 0xa85   :  { %v2709_v53 = vmul.f32 %v2347_v45, %v611_v52 }
 0xa87   :  { %620 = vrot.lane.b32.xlu1 %v2709_v53, %s2498_s29 }
 0xaf9   :  { %v621_v54 = vpop.permute.xlu1 %620 }
 0xafa   :  { %v623_v55 = vsel %vm268_vm4, %v505_v30, %v621_v54 }
 0xafb   :  { %2136 = vmatmul.mubr.msk.f32.vlgmr.msra.gmra.mxu1 %vm160_vm6, %v623_v55 }
 0xafc   :  { %2257 = vmatprep.mubr.msk.f32.mxu1 %vm2497_vm0, %v2496_v0 }
 0xbbb   :  { %v703_v56 = vpop.f32.mrf.mxu1 }
 0xbbc   :  { %v709_v58 = vadd.f32 %v708_v57, %v703_v56 }
 0xbbd   :  { %v705_v21 = vpop.f32.mrf.mxu1 }
 0xbbe   :  { %2350 = vtanh.f32 %v709_v58  ;;  %v2137_v60 = vmul.f32 -1.442695, %v709_v58 }
 0xbc0   :  { %2352 = vpow2.f32 %v2137_v60 }
 0xbcb   :  { %v2351_v59 = vpop.eup %2350 }
 0xbcc   :  { %719 = vrot.lane.b32.xlu0 %v2351_v59, %s2498_s29 }
 0xbcd   :  { %v2353_v61 = vpop.eup %2352 }
 0xbce   :  { %v713_v63 = vadd.f32 1.0, %v2353_v61 }
 0xbd0   :  { %2354 = vrcp.f32 %v713_v63  ;;  %v971_v63 = vld [vmem:[#allocation6 + $0x10] sm:$0xf] }
 0xbd1   :  { %2252 = vmatpush3.msk.msra.mxu1 %vm74_vm1, %v971_v63 }
 0xbd2   :  { %2253 = vmatprep.subr.mxu1 %v2496_v0 }
 0xbd3   :  { %2254 = vmatpush3.msra.mxu1 %v2636_v35 }
 0xbd4   :  { %2255 = vmatprep.subr.mxu1 %v2496_v0 }
 0xbd5   :  { %2256 = vmatpush3.msra.mxu1 %v2640_v36 }
 0xbd6   :  { %1129 = vmatprep.subr.mxu1 %v2565_v3 }
 0xbdd   :  { %v2355_v1 = vpop.eup %2354 }
 0xbde   :  { %v717_v9 = vmul.f32 %v2355_v1, %v2682_v24 }
 0xc3e   :  { %v720_v2 = vpop.permute.xlu0 %719 }
 0xc3f   :  { %v722_v4 = vmul.f32 %v2355_v1, %v720_v2 }
 0xc41   :  { %724 = vrot.lane.b32.xlu1 %v722_v4, %s2499_s3 }
 0xcb3   :  { %v725_v12 = vpop.permute.xlu1 %724 }
 0xcb4   :  { %v2720_v14 = vadd.f32 %v725_v12, %v717_v9 }
 0xcb6   :  { %2356 = vtanh.f32 %v2720_v14 }
 0xcc3   :  { %v2357_v18 = vpop.eup %2356 }
 0xcc4   :  { %730 = vrot.lane.b32.xlu0 %v2357_v18, %s2501_s9 }
 0xcc8   :  { %818 = vrot.lane.b32.xlu0 %v703_v56, %s2500_s30 }
 0xd36   :  { %v731_v19 = vpop.permute.xlu0 %730 }
 0xd37   :  { %v733_v20 = vmul.f32 %v2355_v1, %v731_v19 }
 0xd39   :  { %739 = vrot.lane.b32.xlu1 %v733_v20, %s2502_s10 }
 0xd3a   :  { %v819_v26 = vpop.permute.xlu0 %818 }
 0xd3d   :  { %820 = vrot.lane.b32.xlu1 %v705_v21, %s2500_s30 }
 0xdab   :  { %v740_v22 = vpop.permute.xlu1 %739 }
 0xdac   :  { %2249 = vmatmul.mubr.msk.f32.vlgmr.msra.gmra.mxu0 %vm268_vm4, %v740_v22 }
 0xdad   :  { %895 = vmatpush1.msra.mxu0 %v2572_v5  ;;  %936 = vmatprep.mubr.f32.mxu0 %v2496_v0 }
 0xdae   :  { %896 = vmatprep.subr.mxu0 %v2574_v6 }
 0xdaf   :  { %897 = vmatpush1.msra.mxu0 %v2577_v7  ;;  %v821_v24 = vpop.permute.xlu1 %820 }
 0xdb0   :  { %898 = vmatprep.subr.mxu0 %v2579_v8  ;;  %v822_v28 = vsel %vm350_vm5, %v819_v26, %v821_v24 }
 0xdb1   :  { %899 = vmatpush1.msra.mxu0 %v2586_v10 }
 0xdb2   :  { %900 = vmatprep.subr.mxu0 %v2589_v11 }
 0xdb3   :  { %901 = vmatpush1.msra.mxu0 %v2596_v13 }
 0xdb4   :  { %902 = vmatprep.subr.mxu0 %v2602_v15 }
 0xdb5   :  { %903 = vmatpush1.msra.mxu0 %v2606_v16 }
 0xdb6   :  { %2260 = vmatprep.subr.mxu0 %v2496_v0 }
 0xe6c   :  { %v812_v25 = vpop.f32.mrf.mxu0 }
 0xe6d   :  { %v813_v27 = vadd.f32 %v812_v25, %v737_v23 }
 0xe6e   :  { %v2250_v29 = vpop.f32.mrf.mxu0 }
 0xe6f   :  { %v824_v30 = vadd.f32 %v822_v28, %v813_v27 }
 0xe71   :  { %2358 = vtanh.f32 %v824_v30  ;;  %v2140_v32 = vmul.f32 -1.442695, %v824_v30 }
 0xe73   :  { %2360 = vpow2.f32 %v2140_v32 }
 0xe7e   :  { %v2359_v31 = vpop.eup %2358 }
 0xe7f   :  { %834 = vrot.lane.b32.xlu0 %v2359_v31, %s2498_s29 }
 0xe80   :  { %v2361_v33 = vpop.eup %2360 }
 0xe81   :  { %v828_v34 = vadd.f32 1.0, %v2361_v33 }
 0xe83   :  { %2362 = vrcp.f32 %v828_v34 }
 0xe90   :  { %v2363_v37 = vpop.eup %2362 }
 0xe91   :  { %v832_v40 = vmul.f32 %v2363_v37, %v2705_v50 }
 0xef1   :  { %v835_v38 = vpop.permute.xlu0 %834 }
 0xef2   :  { %v837_v39 = vmul.f32 %v2363_v37, %v835_v38 }
 0xef4   :  { %839 = vrot.lane.b32.xlu1 %v837_v39, %s2499_s3 }
 0xf66   :  { %v840_v41 = vpop.permute.xlu1 %839 }
 0xf67   :  { %v2752_v42 = vadd.f32 %v840_v41, %v832_v40 }
 0xf69   :  { %2364 = vtanh.f32 %v2752_v42 }
 0xf76   :  { %v2365_v43 = vpop.eup %2364 }
 0xf77   :  { %845 = vrot.lane.b32.xlu0 %v2365_v43, %s2501_s9 }
 0xfe9   :  { %v846_v44 = vpop.permute.xlu0 %845 }
 0xfea   :  { %v2756_v45 = vmul.f32 %v2363_v37, %v846_v44 }
 0xfec   :  { %855 = vrot.lane.b32.xlu1 %v2756_v45, %s2498_s29 }
0x105e   :  { %v856_v46 = vpop.permute.xlu1 %855 }
0x105f   :  { %v858_v47 = vsel %vm268_vm4, %v740_v22, %v856_v46 }
0x1060   :  { %2141 = vmatmul.mubr.msk.f32.vlgmr.msra.gmra.mxu0 %vm160_vm6, %v858_v47 }
0x1061   :  { %2266 = vmatprep.mubr.msk.f32.mxu0 %vm2497_vm0, %v2496_v0 }
0x1120   :  { %v938_v48 = vpop.f32.mrf.mxu0 }
0x1121   :  { %v944_v50 = vadd.f32 %v943_v49, %v938_v48 }
0x1122   :  { %v940_v9 = vpop.f32.mrf.mxu0 }
0x1123   :  { %2366 = vtanh.f32 %v944_v50  ;;  %v2142_v52 = vmul.f32 -1.442695, %v944_v50 }
0x1125   :  { %2368 = vpow2.f32 %v2142_v52 }
0x1130   :  { %v2367_v51 = vpop.eup %2366 }
0x1131   :  { %954 = vrot.lane.b32.xlu0 %v2367_v51, %s2498_s29 }
0x1132   :  { %v2369_v54 = vpop.eup %2368 }
0x1133   :  { %v948_v55 = vadd.f32 1.0, %v2369_v54 }
0x1135   :  { %2370 = vrcp.f32 %v948_v55 }
0x1142   :  { %v2371_v56 = vpop.eup %2370 }
0x1143   :  { %v952_v59 = vmul.f32 %v2371_v56, %v2720_v14  ;;  %v972_v14 = vld [vmem:[%s3014_s5] sm:$0x1] }
0x11a3   :  { %v955_v57 = vpop.permute.xlu0 %954 }
0x11a4   :  { %v957_v58 = vmul.f32 %v2371_v56, %v955_v57 }
0x11a6   :  { %959 = vrot.lane.b32.xlu1 %v957_v58, %s2499_s3 }
0x1218   :  { %v960_v60 = vpop.permute.xlu1 %959 }
0x1219   :  { %v2767_v61 = vadd.f32 %v960_v60, %v952_v59 }
0x121b   :  { %2372 = vtanh.f32 %v2767_v61 }
0x1228   :  { %v2373_v1 = vpop.eup %2372 }
0x1229   :  { %965 = vrot.lane.b32.xlu0 %v2373_v1, %s2501_s9 }
0x122d   :  { %1053 = vrot.lane.b32.xlu0 %v938_v48, %s2500_s30 }
0x129b   :  { %v966_v2 = vpop.permute.xlu0 %965 }
0x129c   :  { %v968_v4 = vmul.f32 %v2371_v56, %v966_v2  ;;  %v1206_v56 = vld [vmem:[#allocation6 + $0x10] sm:$0xf] }
0x129d   :  { %2261 = vmatpush3.msk.msra.mxu0 %vm74_vm1, %v1206_v56 }
0x129e   :  { %974 = vrot.lane.b32.xlu1 %v968_v4, %s2502_s10  ;;  %2262 = vmatprep.subr.mxu0 %v2496_v0 }
0x129f   :  { %v1054_v19 = vpop.permute.xlu0 %1053  ;;  %2263 = vmatpush3.msra.mxu0 %v2636_v35 }
0x12a0   :  { %2264 = vmatprep.subr.mxu0 %v2496_v0 }
0x12a1   :  { %2265 = vmatpush3.msra.mxu0 %v2640_v36 }
0x12a2   :  { %1055 = vrot.lane.b32.xlu1 %v940_v9, %s2500_s30  ;;  %1364 = vmatprep.subr.mxu0 %v2565_v3  ;;  %v1207_v3 = vld [vmem:[%s3014_s5] sm:$0x1] }
0x1310   :  { %v975_v12 = vpop.permute.xlu1 %974 }
0x1311   :  { %2258 = vmatmul.mubr.msk.f32.vlgmr.msra.gmra.mxu1 %vm268_vm4, %v975_v12 }
0x1312   :  { %1130 = vmatpush1.msra.mxu1 %v2572_v5  ;;  %1171 = vmatprep.mubr.f32.mxu1 %v2496_v0 }
0x1313   :  { %1131 = vmatprep.subr.mxu1 %v2574_v6 }
0x1314   :  { %1132 = vmatpush1.msra.mxu1 %v2577_v7  ;;  %v1056_v17 = vpop.permute.xlu1 %1055 }
0x1315   :  { %1133 = vmatprep.subr.mxu1 %v2579_v8  ;;  %v1057_v21 = vsel %vm350_vm5, %v1054_v19, %v1056_v17 }
0x1316   :  { %1134 = vmatpush1.msra.mxu1 %v2586_v10 }
0x1317   :  { %1135 = vmatprep.subr.mxu1 %v2589_v11 }
0x1318   :  { %1136 = vmatpush1.msra.mxu1 %v2596_v13 }
0x1319   :  { %1137 = vmatprep.subr.mxu1 %v2602_v15 }
0x131a   :  { %1138 = vmatpush1.msra.mxu1 %v2606_v16 }
0x131b   :  { %2269 = vmatprep.subr.mxu1 %v2496_v0 }
0x13d1   :  { %v1047_v18 = vpop.f32.mrf.mxu1 }
0x13d2   :  { %v1048_v20 = vadd.f32 %v1047_v18, %v972_v14 }
0x13d3   :  { %v2259_v22 = vpop.f32.mrf.mxu1 }
0x13d4   :  { %v1059_v23 = vadd.f32 %v1057_v21, %v1048_v20 }
0x13d6   :  { %2374 = vtanh.f32 %v1059_v23  ;;  %v2145_v25 = vmul.f32 -1.442695, %v1059_v23 }
0x13d8   :  { %2376 = vpow2.f32 %v2145_v25 }
0x13e3   :  { %v2375_v24 = vpop.eup %2374 }
0x13e4   :  { %1069 = vrot.lane.b32.xlu0 %v2375_v24, %s2498_s29  ;;  %v1413_v24 = vld [vmem:[#allocation2 + $0x5] sm:$0x1] }
0x13e5   :  { %v2377_v26 = vpop.eup %2376 }
0x13e6   :  { %v1063_v27 = vadd.f32 1.0, %v2377_v26 }
0x13e8   :  { %2378 = vrcp.f32 %v1063_v27 }
0x13f5   :  { %v2379_v28 = vpop.eup %2378 }
0x13f6   :  { %v1067_v31 = vmul.f32 %v2379_v28, %v2752_v42  ;;  %v1178_v42 = vld [vmem:[#allocation2 + $0x4] sm:$0x1] }
0x1456   :  { %v1070_v29 = vpop.permute.xlu0 %1069 }
0x1457   :  { %v1072_v30 = vmul.f32 %v2379_v28, %v1070_v29 }
0x1459   :  { %1074 = vrot.lane.b32.xlu1 %v1072_v30, %s2499_s3 }
0x14cb   :  { %v1075_v32 = vpop.permute.xlu1 %1074 }
0x14cc   :  { %v2799_v33 = vadd.f32 %v1075_v32, %v1067_v31 }
0x14ce   :  { %2380 = vtanh.f32 %v2799_v33 }
0x14db   :  { %v2381_v34 = vpop.eup %2380 }
0x14dc   :  { %1080 = vrot.lane.b32.xlu0 %v2381_v34, %s2501_s9 }
0x154e   :  { %v1081_v37 = vpop.permute.xlu0 %1080 }
0x154f   :  { %v2803_v38 = vmul.f32 %v2379_v28, %v1081_v37 }
0x1551   :  { %1090 = vrot.lane.b32.xlu1 %v2803_v38, %s2498_s29 }
0x15c3   :  { %v1091_v39 = vpop.permute.xlu1 %1090 }
0x15c4   :  { %v1093_v40 = vsel %vm268_vm4, %v975_v12, %v1091_v39  ;;  %v1441_v39 = vld [vmem:[#allocation6 + $0x10] sm:$0xf] }
0x15c5   :  { %2146 = vmatmul.mubr.msk.f32.vlgmr.msra.gmra.mxu1 %vm160_vm6, %v1093_v40 }
0x15c6   :  { %2275 = vmatprep.mubr.msk.f32.mxu1 %vm2497_vm0, %v2496_v0  ;;  %2270 = vmatpush3.msk.msra.mxu1 %vm74_vm1, %v1441_v39 }
0x15c7   :  { %2271 = vmatprep.subr.mxu1 %v2496_v0 }
0x15c8   :  { %2272 = vmatpush3.msra.mxu1 %v2636_v35 }
0x15c9   :  { %2273 = vmatprep.subr.mxu1 %v2496_v0 }
0x15ca   :  { %2274 = vmatpush3.msra.mxu1 %v2640_v36 }
0x1685   :  { %v1173_v41 = vpop.f32.mrf.mxu1 }
0x1686   :  { %v1179_v43 = vadd.f32 %v1178_v42, %v1173_v41 }
0x1687   :  { %v1175_v60 = vpop.f32.mrf.mxu1 }
0x1688   :  { %2382 = vtanh.f32 %v1179_v43  ;;  %v2147_v46 = vmul.f32 -1.442695, %v1179_v43 }
0x168a   :  { %2384 = vpow2.f32 %v2147_v46  ;;  %v1442_v46 = vld [vmem:[%s3014_s5] sm:$0x1] }
0x1695   :  { %v2383_v44 = vpop.eup %2382 }
0x1696   :  { %1189 = vrot.lane.b32.xlu0 %v2383_v44, %s2498_s29 }
0x1697   :  { %v2385_v47 = vpop.eup %2384 }
0x1698   :  { %v1183_v48 = vadd.f32 1.0, %v2385_v47 }
0x169a   :  { %2386 = vrcp.f32 %v1183_v48 }
0x16a7   :  { %v2387_v49 = vpop.eup %2386 }
0x16a8   :  { %v1187_v52 = vmul.f32 %v2387_v49, %v2767_v61 }
0x1708   :  { %v1190_v50 = vpop.permute.xlu0 %1189 }
0x1709   :  { %v1192_v51 = vmul.f32 %v2387_v49, %v1190_v50 }
0x170b   :  { %1194 = vrot.lane.b32.xlu1 %v1192_v51, %s2499_s3 }
0x177d   :  { %v1195_v54 = vpop.permute.xlu1 %1194 }
0x177e   :  { %v2814_v55 = vadd.f32 %v1195_v54, %v1187_v52 }
0x1780   :  { %2388 = vtanh.f32 %v2814_v55 }
0x178d   :  { %v2389_v57 = vpop.eup %2388 }
0x178e   :  { %1200 = vrot.lane.b32.xlu0 %v2389_v57, %s2501_s9 }
0x1792   :  { %1288 = vrot.lane.b32.xlu0 %v1173_v41, %s2500_s30 }
0x1800   :  { %v1201_v58 = vpop.permute.xlu0 %1200 }
0x1801   :  { %v1203_v59 = vmul.f32 %v2387_v49, %v1201_v58 }
0x1803   :  { %1209 = vrot.lane.b32.xlu1 %v1203_v59, %s2502_s10 }
0x1807   :  { %1290 = vrot.lane.b32.xlu1 %v1175_v60, %s2500_s30 }
0x1875   :  { %v1210_v61 = vpop.permute.xlu1 %1209 }
0x1876   :  { %2267 = vmatmul.mubr.msk.f32.vlgmr.msra.gmra.mxu0 %vm268_vm4, %v1210_v61 }
0x1877   :  { %1365 = vmatpush1.msra.mxu0 %v2572_v5  ;;  %1406 = vmatprep.mubr.f32.mxu0 %v2496_v0 }
0x1878   :  { %1366 = vmatprep.subr.mxu0 %v2574_v6 }
0x1879   :  { %1367 = vmatpush1.msra.mxu0 %v2577_v7  ;;  %v1291_v5 = vpop.permute.xlu1 %1290  ;;  %v1289_v7 = vpop.permute.xlu0 %1288 }
0x187a   :  { %1368 = vmatprep.subr.mxu0 %v2579_v8 }
0x187b   :  { %1369 = vmatpush1.msra.mxu0 %v2586_v10  ;;  %v1292_v10 = vsel %vm350_vm5, %v1289_v7, %v1291_v5  ;;  %v1573_v7 = vld [vmem:[#allocation4 + $0x48] sm:$0xff] }
0x187c   :  { %1370 = vmatprep.subr.mxu0 %v2589_v11  ;;  %1599 = vmatprep.subr.mxu1 %v1573_v7 }
0x187d   :  { %1371 = vmatpush1.msra.mxu0 %v2596_v13 }
0x187e   :  { %1372 = vmatprep.subr.mxu0 %v2602_v15 }
0x187f   :  { %1373 = vmatpush1.msra.mxu0 %v2606_v16 }
0x1880   :  { %2278 = vmatprep.subr.mxu0 %v2496_v0 }
0x1936   :  { %v1282_v6 = vpop.f32.mrf.mxu0 }
0x1937   :  { %v1283_v8 = vadd.f32 %v1282_v6, %v1207_v3 }
0x1938   :  { %v2268_v63 = vpop.f32.mrf.mxu0 }
0x1939   :  { %v1294_v11 = vadd.f32 %v1292_v10, %v1283_v8  ;;  %v2885_v8 = vld [vmem:[#allocation4 + $0x40] sm:$0xff]  ;;  %v2887_v10 = vld [vmem:[#allocation4 + $0x38] sm:$0xff]  ;;  %v2889_v63 = vld [vmem:[#allocation4 + $0x30] sm:$0xff] }
0x193b   :  { %2390 = vtanh.f32 %v1294_v11  ;;  %v2150_v15 = vmul.f32 -1.442695, %v1294_v11  ;;  %v2892_v11 = vld [vmem:[#allocation4 + $0x28] sm:$0xff] }
0x193d   :  { %2392 = vpow2.f32 %v2150_v15  ;;  %v1567_v15 = vld [vmem:[#allocation4 + $0x18] sm:$0xff] }
0x1948   :  { %v2391_v13 = vpop.eup %2390 }
0x1949   :  { %1304 = vrot.lane.b32.xlu0 %v2391_v13, %s2498_s29  ;;  %v1568_v13 = vld [vmem:[#allocation4 + $0x20] sm:$0xff] }
0x194a   :  { %v2393_v16 = vpop.eup %2392 }
0x194b   :  { %v1298_v1 = vadd.f32 1.0, %v2393_v16  ;;  %v1566_v16 = vld [vmem:[#allocation4 + $0x10] sm:$0xff] }
0x194d   :  { %2394 = vrcp.f32 %v1298_v1  ;;  %v1565_v1 = vld [vmem:[#allocation4 + $0x8] sm:$0xff] }
0x195a   :  { %v2395_v2 = vpop.eup %2394 }
0x195b   :  { %v1302_v12 = vmul.f32 %v2395_v2, %v2799_v33 }
0x19bb   :  { %v1305_v4 = vpop.permute.xlu0 %1304 }
0x19bc   :  { %v1307_v9 = vmul.f32 %v2395_v2, %v1305_v4  ;;  %v1564_v4 = vld [vmem:[#allocation4] sm:$0xff] }
0x19be   :  { %1309 = vrot.lane.b32.xlu1 %v1307_v9, %s2499_s3 }
0x1a30   :  { %v1310_v14 = vpop.permute.xlu1 %1309 }
0x1a31   :  { %v2846_v17 = vadd.f32 %v1310_v14, %v1302_v12 }
0x1a33   :  { %2396 = vtanh.f32 %v2846_v17 }
0x1a40   :  { %v2397_v18 = vpop.eup %2396 }
0x1a41   :  { %1315 = vrot.lane.b32.xlu0 %v2397_v18, %s2501_s9 }
0x1ab3   :  { %v1316_v19 = vpop.permute.xlu0 %1315 }
0x1ab4   :  { %v2850_v20 = vmul.f32 %v2395_v2, %v1316_v19  ;;  %v1648_v19 = vld [vmem:[#allocation2 + $0x6] sm:$0x1] }
0x1ab6   :  { %1325 = vrot.lane.b32.xlu1 %v2850_v20, %s2498_s29 }
0x1b28   :  { %v1326_v21 = vpop.permute.xlu1 %1325 }
0x1b29   :  { %v1328_v22 = vsel %vm268_vm4, %v1210_v61, %v1326_v21 }
0x1b2a   :  { %2151 = vmatmul.mubr.msk.f32.vlgmr.msra.gmra.mxu0 %vm160_vm6, %v1328_v22 }
0x1b2b   :  { %2284 = vmatprep.mubr.msk.f32.mxu0 %vm2497_vm0, %v2496_v0 }
0x1bea   :  { %v1408_v23 = vpop.f32.mrf.mxu0 }
0x1beb   :  { %v1414_v25 = vadd.f32 %v1413_v24, %v1408_v23 }
0x1bec   :  { %v1410_v43 = vpop.f32.mrf.mxu0 }
0x1bed   :  { %2398 = vtanh.f32 %v1414_v25  ;;  %v2152_v27 = vmul.f32 -1.442695, %v1414_v25 }
0x1bef   :  { %2400 = vpow2.f32 %v2152_v27 }
0x1bfa   :  { %v2399_v26 = vpop.eup %2398 }
0x1bfb   :  { %1424 = vrot.lane.b32.xlu0 %v2399_v26, %s2498_s29 }
0x1bfc   :  { %v2401_v28 = vpop.eup %2400 }
0x1bfd   :  { %v1418_v29 = vadd.f32 1.0, %v2401_v28 }
0x1bff   :  { %2402 = vrcp.f32 %v1418_v29 }
0x1c0c   :  { %v2403_v30 = vpop.eup %2402 }
0x1c0d   :  { %v1422_v33 = vmul.f32 %v2403_v30, %v2814_v55 }
0x1c6d   :  { %v1425_v31 = vpop.permute.xlu0 %1424 }
0x1c6e   :  { %v1427_v32 = vmul.f32 %v2403_v30, %v1425_v31 }
0x1c70   :  { %1429 = vrot.lane.b32.xlu1 %v1427_v32, %s2499_s3  ;;  %v1676_v32 = vld [vmem:[#allocation6 + $0x10] sm:$0xf] }
0x1c71   :  { %2279 = vmatpush3.msk.msra.mxu0 %vm74_vm1, %v1676_v32 }
0x1c72   :  { %2280 = vmatprep.subr.mxu0 %v2496_v0 }
0x1c73   :  { %2281 = vmatpush3.msra.mxu0 %v2636_v35  ;;  %v1677_v35 = vld [vmem:[%s3014_s5] sm:$0x1] }
0x1c74   :  { %2282 = vmatprep.subr.mxu0 %v2496_v0 }
0x1c75   :  { %2283 = vmatpush3.msra.mxu0 %v2640_v36 }
0x1c76   :  { %1834 = vmatprep.subr.mxu0 %v1573_v7  ;;  %v1883_v7 = vld [vmem:[#allocation2 + $0x7] sm:$0x1] }
0x1ce2   :  { %v1430_v34 = vpop.permute.xlu1 %1429 }
0x1ce3   :  { %v2861_v37 = vadd.f32 %v1430_v34, %v1422_v33 }
0x1ce5   :  { %2404 = vtanh.f32 %v2861_v37 }
0x1cf2   :  { %v2405_v40 = vpop.eup %2404 }
0x1cf3   :  { %1435 = vrot.lane.b32.xlu0 %v2405_v40, %s2501_s9 }
0x1cf7   :  { %1523 = vrot.lane.b32.xlu0 %v1408_v23, %s2500_s30 }
0x1d65   :  { %v1436_v41 = vpop.permute.xlu0 %1435 }
0x1d66   :  { %v1438_v42 = vmul.f32 %v2403_v30, %v1436_v41 }
0x1d68   :  { %1444 = vrot.lane.b32.xlu1 %v1438_v42, %s2502_s10 }
0x1d69   :  { %v1524_v49 = vpop.permute.xlu0 %1523 }
0x1d6c   :  { %1525 = vrot.lane.b32.xlu1 %v1410_v43, %s2500_s30 }
0x1dda   :  { %v1445_v44 = vpop.permute.xlu1 %1444 }
0x1ddb   :  { %2276 = vmatmul.mubr.msk.f32.vlgmr.msra.gmra.mxu1 %vm268_vm4, %v1445_v44 }
0x1ddc   :  { %1641 = vmatprep.mubr.f32.mxu1 %v2496_v0  ;;  %1600 = vmatpush1.msra.mxu1 %v2885_v8 }
0x1ddd   :  { %1601 = vmatprep.subr.mxu1 %v2887_v10 }
0x1dde   :  { %v1526_v47 = vpop.permute.xlu1 %1525  ;;  %1602 = vmatpush1.msra.mxu1 %v2889_v63 }
0x1ddf   :  { %v1527_v51 = vsel %vm350_vm5, %v1524_v49, %v1526_v47  ;;  %1603 = vmatprep.subr.mxu1 %v2892_v11 }
0x1de0   :  { %1604 = vmatpush1.msra.mxu1 %v1568_v13 }
0x1de1   :  { %1605 = vmatprep.subr.mxu1 %v1567_v15 }
0x1de2   :  { %1606 = vmatpush1.msra.mxu1 %v1566_v16 }
0x1de3   :  { %1607 = vmatprep.subr.mxu1 %v1565_v1 }
0x1de4   :  { %1608 = vmatpush1.msra.mxu1 %v1564_v4 }
0x1de5   :  { %2287 = vmatprep.subr.mxu1 %v2496_v0 }
0x1e9b   :  { %v1517_v48 = vpop.f32.mrf.mxu1 }
0x1e9c   :  { %v1518_v50 = vadd.f32 %v1517_v48, %v1442_v46 }
0x1e9d   :  { %v2277_v52 = vpop.f32.mrf.mxu1 }
0x1e9e   :  { %v1529_v54 = vadd.f32 %v1527_v51, %v1518_v50 }
0x1ea0   :  { %2406 = vtanh.f32 %v1529_v54  ;;  %v2155_v56 = vmul.f32 -1.442695, %v1529_v54 }
0x1ea2   :  { %2408 = vpow2.f32 %v2155_v56 }
0x1ead   :  { %v2407_v55 = vpop.eup %2406 }
0x1eae   :  { %1539 = vrot.lane.b32.xlu0 %v2407_v55, %s2498_s29 }
0x1eaf   :  { %v2409_v57 = vpop.eup %2408 }
0x1eb0   :  { %v1533_v58 = vadd.f32 1.0, %v2409_v57 }
0x1eb2   :  { %2410 = vrcp.f32 %v1533_v58 }
0x1ebf   :  { %v2411_v59 = vpop.eup %2410 }
0x1ec0   :  { %v1537_v3 = vmul.f32 %v2411_v59, %v2846_v17 }
0x1f20   :  { %v1540_v60 = vpop.permute.xlu0 %1539 }
0x1f21   :  { %v1542_v61 = vmul.f32 %v2411_v59, %v1540_v60 }
0x1f23   :  { %1544 = vrot.lane.b32.xlu1 %v1542_v61, %s2499_s3 }
0x1f95   :  { %v1545_v5 = vpop.permute.xlu1 %1544 }
0x1f96   :  { %v2882_v6 = vadd.f32 %v1545_v5, %v1537_v3 }
0x1f98   :  { %2412 = vtanh.f32 %v2882_v6 }
0x1fa5   :  { %v2413_v2 = vpop.eup %2412 }
0x1fa6   :  { %1550 = vrot.lane.b32.xlu0 %v2413_v2, %s2501_s9 }
0x2018   :  { %v1551_v9 = vpop.permute.xlu0 %1550 }
0x2019   :  { %v2899_v12 = vmul.f32 %v2411_v59, %v1551_v9 }
0x201b   :  { %1560 = vrot.lane.b32.xlu1 %v2899_v12, %s2498_s29 }
0x208d   :  { %v1561_v14 = vpop.permute.xlu1 %1560 }
0x208e   :  { %v1563_v17 = vsel %vm268_vm4, %v1445_v44, %v1561_v14  ;;  %v1911_v14 = vld [vmem:[#allocation6 + $0x10] sm:$0xf] }
0x208f   :  { %2156 = vmatmul.mubr.msk.f32.vlgmr.msra.gmra.mxu1 %vm160_vm6, %v1563_v17  ;;  %v1910_v17 = vld [vmem:[#allocation6 + $0x8] sm:$0xff] }
0x2090   :  { %2293 = vmatprep.mubr.msk.f32.mxu1 %vm2497_vm0, %v2496_v0  ;;  %2288 = vmatpush3.msk.msra.mxu1 %vm74_vm1, %v1911_v14 }
0x2091   :  { %2289 = vmatprep.subr.mxu1 %v2496_v0 }
0x2092   :  { %2290 = vmatpush3.msra.mxu1 %v1910_v17 }
0x2093   :  { %2291 = vmatprep.subr.mxu1 %v2496_v0 }
0x214f   :  { %v1643_v18 = vpop.f32.mrf.mxu1 }
0x2150   :  { %v1649_v21 = vadd.f32 %v1648_v19, %v1643_v18 }
0x2151   :  { %v1645_v39 = vpop.f32.mrf.mxu1 }
0x2152   :  { %2414 = vtanh.f32 %v1649_v21  ;;  %v2157_v23 = vmul.f32 -1.442695, %v1649_v21 }
0x2154   :  { %2416 = vpow2.f32 %v2157_v23 }
0x215f   :  { %v2415_v22 = vpop.eup %2414 }
0x2160   :  { %1659 = vrot.lane.b32.xlu0 %v2415_v22, %s2498_s29 }
0x2161   :  { %v2417_v24 = vpop.eup %2416 }
0x2162   :  { %v1653_v25 = vadd.f32 1.0, %v2417_v24 }
0x2164   :  { %2418 = vrcp.f32 %v1653_v25  ;;  %v1912_v25 = vld [vmem:[%s3014_s5] sm:$0x1] }
0x2171   :  { %v2419_v26 = vpop.eup %2418 }
0x2172   :  { %v1657_v29 = vmul.f32 %v2419_v26, %v2861_v37 }
0x21d2   :  { %v1660_v27 = vpop.permute.xlu0 %1659 }
0x21d3   :  { %v1662_v28 = vmul.f32 %v2419_v26, %v1660_v27 }
0x21d5   :  { %1664 = vrot.lane.b32.xlu1 %v1662_v28, %s2499_s3 }
0x2247   :  { %v1665_v30 = vpop.permute.xlu1 %1664 }
0x2248   :  { %v2910_v31 = vadd.f32 %v1665_v30, %v1657_v29 }
0x224a   :  { %2420 = vtanh.f32 %v2910_v31 }
0x2257   :  { %v2421_v33 = vpop.eup %2420 }
0x2258   :  { %1670 = vrot.lane.b32.xlu0 %v2421_v33, %s2501_s9 }
0x225c   :  { %1758 = vrot.lane.b32.xlu0 %v1643_v18, %s2500_s30  ;;  %v1909_v18 = vld [vmem:[#allocation6] sm:$0xff] }
0x225d   :  { %2292 = vmatpush3.msra.mxu1 %v1909_v18 }
0x225e   :  { %2296 = vmatprep.subr.mxu1 %v2496_v0 }
0x22ca   :  { %v1671_v34 = vpop.permute.xlu0 %1670 }
0x22cb   :  { %v1673_v37 = vmul.f32 %v2419_v26, %v1671_v34 }
0x22cd   :  { %1679 = vrot.lane.b32.xlu1 %v1673_v37, %s2502_s10 }
0x22ce   :  { %v1759_v42 = vpop.permute.xlu0 %1758 }
0x22d1   :  { %1760 = vrot.lane.b32.xlu1 %v1645_v39, %s2500_s30 }
0x233f   :  { %v1680_v40 = vpop.permute.xlu1 %1679 }
0x2340   :  { %2285 = vmatmul.mubr.msk.f32.vlgmr.msra.gmra.mxu0 %vm268_vm4, %v1680_v40 }
0x2341   :  { %1835 = vmatpush1.msra.mxu0 %v2885_v8  ;;  %1876 = vmatprep.mubr.f32.mxu0 %v2496_v0 }
0x2342   :  { %1836 = vmatprep.subr.mxu0 %v2887_v10 }
0x2343   :  { %1837 = vmatpush1.msra.mxu0 %v2889_v63  ;;  %v1761_v36 = vpop.permute.xlu1 %1760 }
0x2344   :  { %1838 = vmatprep.subr.mxu0 %v2892_v11  ;;  %v1762_v44 = vsel %vm350_vm5, %v1759_v42, %v1761_v36 }
0x2345   :  { %1839 = vmatpush1.msra.mxu0 %v1568_v13 }
0x2346   :  { %1840 = vmatprep.subr.mxu0 %v1567_v15 }
0x2347   :  { %1841 = vmatpush1.msra.mxu0 %v1566_v16 }
0x2348   :  { %1842 = vmatprep.subr.mxu0 %v1565_v1 }
0x2349   :  { %1843 = vmatpush1.msra.mxu0 %v1564_v4 }
0x2400   :  { %v1752_v41 = vpop.f32.mrf.mxu0 }
0x2401   :  { %v1753_v43 = vadd.f32 %v1752_v41, %v1677_v35 }
0x2402   :  { %v2286_v46 = vpop.f32.mrf.mxu0 }
0x2403   :  { %v1764_v47 = vadd.f32 %v1762_v44, %v1753_v43 }
0x2405   :  { %2422 = vtanh.f32 %v1764_v47  ;;  %v2160_v49 = vmul.f32 -1.442695, %v1764_v47  ;;  %v2032_v47 = vld [vmem:[%s3015_s6 + $0x10] sm:$0xf] }
0x2407   :  { %2424 = vpow2.f32 %v2160_v49 }
0x2412   :  { %v2423_v48 = vpop.eup %2422 }
0x2413   :  { %1774 = vrot.lane.b32.xlu0 %v2423_v48, %s2498_s29  ;;  %v2031_v48 = vld [vmem:[%s3015_s6 + $0x8] sm:$0xff] }
0x2414   :  { %v2425_v50 = vpop.eup %2424 }
0x2415   :  { %v1768_v51 = vadd.f32 1.0, %v2425_v50 }
0x2417   :  { %2426 = vrcp.f32 %v1768_v51 }
0x2424   :  { %v2427_v52 = vpop.eup %2426 }
0x2425   :  { %v1772_v56 = vmul.f32 %v2427_v52, %v2882_v6 }
0x2485   :  { %v1775_v54 = vpop.permute.xlu0 %1774 }
0x2486   :  { %v1777_v55 = vmul.f32 %v2427_v52, %v1775_v54 }
0x2488   :  { %1779 = vrot.lane.b32.xlu1 %v1777_v55, %s2499_s3 }
0x24fa   :  { %v1780_v57 = vpop.permute.xlu1 %1779 }
0x24fb   :  { %v2935_v58 = vadd.f32 %v1780_v57, %v1772_v56 }
0x24fd   :  { %2428 = vtanh.f32 %v2935_v58 }
0x250a   :  { %v2429_v59 = vpop.eup %2428 }
0x250b   :  { %1785 = vrot.lane.b32.xlu0 %v2429_v59, %s2501_s9 }
0x257d   :  { %v1786_v60 = vpop.permute.xlu0 %1785 }
0x257e   :  { %v2939_v61 = vmul.f32 %v2427_v52, %v1786_v60 }
0x2580   :  { %1795 = vrot.lane.b32.xlu1 %v2939_v61, %s2498_s29 }
0x25f2   :  { %v1796_v3 = vpop.permute.xlu1 %1795 }
0x25f3   :  { %v1798_v5 = vsel %vm268_vm4, %v1680_v40, %v1796_v3 }
0x25f4   :  { %2161 = vmatmul.mubr.msk.f32.vlgmr.msra.gmra.mxu0 %vm160_vm6, %v1798_v5 }
0x26b4   :  { %v1878_v6 = vpop.f32.mrf.mxu0 }
0x26b5   :  { %v1884_v8 = vadd.f32 %v1883_v7, %v1878_v6 }
0x26b6   :  { %v1880_v23 = vpop.f32.mrf.mxu0 }
0x26b7   :  { %2430 = vtanh.f32 %v1884_v8  ;;  %v2162_v63 = vmul.f32 -1.442695, %v1884_v8 }
0x26b9   :  { %2432 = vpow2.f32 %v2162_v63 }
0x26c4   :  { %v2431_v10 = vpop.eup %2430 }
0x26c5   :  { %1894 = vrot.lane.b32.xlu0 %v2431_v10, %s2498_s29 }
0x26c6   :  { %v2433_v11 = vpop.eup %2432 }
0x26c7   :  { %v1888_v13 = vadd.f32 1.0, %v2433_v11 }
0x26c9   :  { %2434 = vrcp.f32 %v1888_v13 }
0x26d6   :  { %v2435_v15 = vpop.eup %2434 }
0x26d7   :  { %v1892_v2 = vmul.f32 %v2435_v15, %v2910_v31 }
0x2737   :  { %v1895_v16 = vpop.permute.xlu0 %1894 }
0x2738   :  { %v1897_v1 = vmul.f32 %v2435_v15, %v1895_v16 }
0x273a   :  { %1899 = vrot.lane.b32.xlu1 %v1897_v1, %s2499_s3 }
0x27ac   :  { %v1900_v4 = vpop.permute.xlu1 %1899 }
0x27ad   :  { %v1902_v9 = vadd.f32 %v1900_v4, %v1892_v2 }
0x27af   :  { %2436 = vtanh.f32 %v1902_v9 }
0x27bc   :  { %v2437_v19 = vpop.eup %2436 }
0x27bd   :  { %1905 = vrot.lane.b32.xlu0 %v2437_v19, %s2501_s9 }
0x27c1   :  { %1993 = vrot.lane.b32.xlu0 %v1878_v6, %s2500_s30 }
0x282f   :  { %v1906_v21 = vpop.permute.xlu0 %1905 }
0x2830   :  { %v1908_v22 = vmul.f32 %v2435_v15, %v1906_v21 }
0x2832   :  { %1914 = vrot.lane.b32.xlu1 %v1908_v22, %s2502_s10 }
0x2833   :  { %v1994_v28 = vpop.permute.xlu0 %1993 }
0x2836   :  { %1995 = vrot.lane.b32.xlu1 %v1880_v23, %s2500_s30 }
0x28a4   :  { %v1915_v24 = vpop.permute.xlu1 %1914 }
0x28a5   :  { %2294 = vmatmul.mubr.msk.f32.vlgmr.msra.gmra.mxu1 %vm268_vm4, %v1915_v24 }
0x28a6   :  { %2302 = vmatprep.mubr.msk.f32.mxu1 %vm2497_vm0, %v2496_v0  ;;  %2297 = vmatpush3.msk.msra.mxu1 %vm74_vm1, %v2032_v47 }
0x28a7   :  { %2298 = vmatprep.subr.mxu1 %v2496_v0 }
0x28a8   :  { %v1996_v26 = vpop.permute.xlu1 %1995  ;;  %2299 = vmatpush3.msra.mxu1 %v2031_v48 }
0x28a9   :  { %v1997_v30 = vsel %vm350_vm5, %v1994_v28, %v1996_v26  ;;  %2300 = vmatprep.subr.mxu1 %v2496_v0  ;;  %v2166_v0 = vld [vmem:[%s3016_s7] ss:$0 sm:$0xff] }
0x2965   :  { %v1987_v27 = vpop.f32.mrf.mxu1 }
0x2966   :  { %v1988_v29 = vadd.f32 %v1987_v27, %v1912_v25 }
0x2967   :  { %v2295_v31 = vpop.f32.mrf.mxu1 }
0x2968   :  { %v1999_v32 = vadd.f32 %v1997_v30, %v1988_v29 }
0x296a   :  { %2438 = vtanh.f32 %v1999_v32  ;;  %v2165_v34 = vmul.f32 -1.442695, %v1999_v32 }
0x296c   :  { %2440 = vpow2.f32 %v2165_v34 }
0x2977   :  { %v2439_v33 = vpop.eup %2438 }
0x2978   :  { %2009 = vrot.lane.b32.xlu0 %v2439_v33, %s2498_s29 }
0x2979   :  { %v2441_v37 = vpop.eup %2440 }
0x297a   :  { %v2003_v39 = vadd.f32 1.0, %v2441_v37 }
0x297c   :  { %2442 = vrcp.f32 %v2003_v39 }
0x2989   :  { %v2443_v40 = vpop.eup %2442 }
0x298a   :  { %v2007_v41 = vmul.f32 %v2443_v40, %v2935_v58 }
0x29ea   :  { %v2010_v35 = vpop.permute.xlu0 %2009 }
0x29eb   :  { %v2012_v36 = vmul.f32 %v2443_v40, %v2010_v35 }
0x29ed   :  { %2014 = vrot.lane.b32.xlu1 %v2012_v36, %s2499_s3 }
0x29f1   :  { %379 = vrot.lane.b32.xlu1 %v2662_v62, %s2502_s10 }
0x29f5   :  { %850 = vrot.lane.b32.xlu1 %v2756_v45, %s2502_s10 }
0x29f9   :  { %1320 = vrot.lane.b32.xlu1 %v2850_v20, %s2502_s10 }
0x29fd   :  { %1790 = vrot.lane.b32.xlu1 %v2939_v61, %s2502_s10 }
0x2a5f   :  { %v2015_v42 = vpop.permute.xlu1 %2014 }
0x2a60   :  { %v2017_v43 = vadd.f32 %v2015_v42, %v2007_v41 }
0x2a62   :  { %2444 = vtanh.f32 %v2017_v43 }
0x2a63   :  { %v380_v44 = vpop.permute.xlu1 %379 }
0x2a64   :  { %383 = vst.msk [vmem:[#allocation3] sm:$0x1] %vm382_vm7, %v380_v44 }
0x2a67   :  { %v851_v46 = vpop.permute.xlu1 %850 }
0x2a68   :  { %853 = vst.msk [vmem:[#allocation3 + $0x2] sm:$0x1] %vm382_vm7, %v851_v46 }
0x2a6b   :  { %v1321_v62 = vpop.permute.xlu1 %1320 }
0x2a6c   :  { %1323 = vst.msk [vmem:[#allocation3 + $0x4] sm:$0x1] %vm382_vm7, %v1321_v62 }
0x2a6f   :  { %v2445_v45 = vpop.eup %2444  ;;  %v1791_v20 = vpop.permute.xlu1 %1790 }
0x2a70   :  { %1793 = vst.msk [vmem:[#allocation3 + $0x6] sm:$0x1] %vm382_vm7, %v1791_v20  ;;  %2020 = vrot.lane.b32.xlu0 %v2445_v45, %s2501_s9 }
0x2a74   :  { %615 = vrot.lane.b32.xlu0 %v2709_v53, %s2502_s10  ;;  %v2030_v53 = vld [vmem:[%s3015_s6] sm:$0xff] }
0x2a75   :  { %2301 = vmatpush3.msra.mxu1 %v2030_v53 }
0x2a78   :  { %1085 = vrot.lane.b32.xlu0 %v2803_v38, %s2502_s10 }
0x2a7c   :  { %1555 = vrot.lane.b32.xlu0 %v2899_v12, %s2502_s10 }
0x2ae2   :  { %v2021_v38 = vpop.permute.xlu0 %2020 }
0x2ae3   :  { %v2023_v12 = vmul.f32 %v2443_v40, %v2021_v38 }
0x2ae5   :  { %2025 = vrot.lane.b32.xlu0 %v2023_v12, %s2502_s10 }
0x2ae6   :  { %v616_v49 = vpop.permute.xlu0 %615 }
0x2ae7   :  { %618 = vst.msk [vmem:[#allocation3 + $0x1] sm:$0x1] %vm382_vm7, %v616_v49 }
0x2aea   :  { %v1086_v50 = vpop.permute.xlu0 %1085 }
0x2aeb   :  { %1088 = vst.msk [vmem:[#allocation3 + $0x3] sm:$0x1] %vm382_vm7, %v1086_v50 }
0x2aee   :  { %v1556_v51 = vpop.permute.xlu0 %1555 }
0x2aef   :  { %1558 = vst.msk [vmem:[#allocation3 + $0x5] sm:$0x1] %vm382_vm7, %v1556_v51 }
0x2b57   :  { %v2026_v52 = vpop.permute.xlu0 %2025 }
0x2b58   :  { %2028 = vst.msk [vmem:[#allocation3 + $0x7] sm:$0x1] %vm382_vm7, %v2026_v52 }
0x2b5f   :  { %v2029_v54 = vld [vmem:[#allocation3] sm:$0xff] }
0x2b60   :  { %2303 = vmatmul.mubr.msk.f32.vlgmr.msra.gmra.mxu1 %vm268_vm4, %v2029_v54 }
0x2c20   :  { %v2112_v55 = vpop.f32.mrf.mxu1 }
0x2c21   :  { %v2113_v56 = vadd.f32 %v2166_v0, %v2112_v55 }
0x2c22   :  { %v2304_v57 = vpop.f32.mrf.mxu1 }
0x2c23   :  { %2117 = vst.msk [vmem:[%s3017_s8] sm:$0xff] %vm2116_vm8, %v2113_v56 }
0x2c24   :  { %2122 = vsyncpa [#allocation5], 1 }
0x2c25   :  { %2123 = vsyncpa [#allocation7], 1 }

</bundles_post_ra>
